<compile_context>
chip_gen: v6e
topology: v6e:2x2x1
jax: 0.10.0
libtpu: 0.0.40
codegen_flags: <defaults>
</compile_context>

<pallas_src>
import functools

import jax
import jax.numpy as jnp
import numpy as np
from jax import lax
from jax.experimental import pallas as pl
from jax.experimental.pallas import tpu as pltpu

VMEM_SPEC = pl.BlockSpec(memory_space=pltpu.MemorySpace.VMEM)


# ----------------------------- fused kernel ----------------------------------
def _tds_cnn_lstm_kernel(x_ref, wc_ref, bc_ref, res_ref, wih_ref, bg_ref,
                         whh_ref, wp_ref, bp_ref, gamma_ref, beta_ref,
                         o_ref, conv_scr, gxf_scr, gxb_scr, h_scr, *, n_batch):
    # x_ref:   (TN, KW*C) bf16   im2col input slab (tap k in cols [k*C:(k+1)*C])
    # wc_ref:  (KW*C, C)  bf16   stacked block-diagonal conv weights
    # bc_ref:  (1, C)     f32    width-replicated conv bias
    # res_ref: (TN, C)    f32    inputs[KW-1:] residual slab
    # wih_ref: (C, 8H)    bf16   [Wih_f | Wih_b], gate order [i|f|o|g]
    # bg_ref:  (1, 8H)    f32    [b_ih_f+b_hh_f | b_ih_b+b_hh_b], reordered
    # whh_ref: (2H, 8H)   bf16   block-diag [[Whh_f, 0], [0, Whh_b]], reordered
    # wp_ref:  (2H, C)    bf16   proj_w.T; bp/gamma/beta: (1, C) f32
    # o_ref:   (TN, C)    f32
    TN, C = o_ref.shape
    N = n_batch
    T_out = TN // N
    G8 = whh_ref.shape[1]
    G4 = G8 // 2
    H = G4 // 4
    f32, bf16 = jnp.float32, jnp.bfloat16

    # ---- Stage 1: Conv2d(1,KW) + ReLU as ONE lane-dense im2col matmul -------
    conv = jnp.maximum(
        jnp.dot(x_ref[...], wc_ref[...], preferred_element_type=f32) + bc_ref[...],
        0.0)                                                     # (TN, C) f32

    # ---- Stage 2: hoisted LSTM input projection (both directions, one MXU) --
    gx = jnp.dot(conv.astype(bf16), wih_ref[...],
                 preferred_element_type=f32) + bg_ref[...]       # (TN, 8H) f32
    gxf_scr[...] = gx[:, :G4]
    gxb_scr[...] = gx[:, G4:]

    # conv output + input residual kept resident for Stage 4 (f32, exact res)
    conv_scr[...] = conv + res_ref[...]

    # ---- Stage 3: fused fwd/bwd recurrence (one MXU push per step) ----------
    whh = whh_ref[...]                                           # (2H, 8H) bf16

    def step(t, carry):
        h, cf, cb = carry                                        # (N,2H),(N,H),(N,H)
        rf = pl.multiple_of(t * N, N)
        tb = T_out - 1 - t
        rb = pl.multiple_of(tb * N, N)
        rec = jnp.dot(h.astype(bf16), whh, preferred_element_type=f32)  # (N, 8H)
        gf = gxf_scr[pl.ds(rf, N), :] + rec[:, :G4]
        gb = gxb_scr[pl.ds(rb, N), :] + rec[:, G4:]
        # gate layout per direction: [i | f | o | g] -> one sigmoid, one tanh
        sf = jax.nn.sigmoid(gf[:, :3 * H])
        sb = jax.nn.sigmoid(gb[:, :3 * H])
        ggf = jnp.tanh(gf[:, 3 * H:])
        ggb = jnp.tanh(gb[:, 3 * H:])
        cf = sf[:, H:2 * H] * cf + sf[:, :H] * ggf
        cb = sb[:, H:2 * H] * cb + sb[:, :H] * ggb
        hf = sf[:, 2 * H:] * jnp.tanh(cf)
        hb = sb[:, 2 * H:] * jnp.tanh(cb)
        h_scr[pl.ds(rf, N), pl.ds(0, H)] = hf
        h_scr[pl.ds(rb, N), pl.ds(H, H)] = hb
        return jnp.concatenate([hf, hb], axis=-1), cf, cb

    h0 = jnp.zeros((N, 2 * H), f32)
    c0 = jnp.zeros((N, H), f32)
    lax.fori_loop(0, T_out, step, (h0, c0, c0), unroll=min(8, T_out))

    # ---- Stage 4: single projection matmul + residuals + LayerNorm ----------
    proj = jnp.dot(h_scr[...].astype(bf16), wp_ref[...],
                   preferred_element_type=f32) + bp_ref[...]     # (TN, C) f32
    z = proj + conv_scr[...]
    mean = jnp.mean(z, axis=-1, keepdims=True)
    var = jnp.mean(jnp.square(z - mean), axis=-1, keepdims=True)
    out = (z - mean) * lax.rsqrt(var + 1e-5) * gamma_ref[...] + beta_ref[...]
    o_ref[...] = out.astype(o_ref.dtype)


# ------------------------------- wrapper --------------------------------------
def tds_cnn_lstm_block(inputs, params, channels, width, kernel_width, hidden_size):
    T_in, N, C = inputs.shape
    assert C == channels * width
    KW, H = kernel_width, hidden_size
    T_out = T_in - KW + 1
    TN = T_out * N
    f32, bf16 = jnp.float32, jnp.bfloat16

    def reorder_gates(w):  # first-axis gate order [i,f,g,o] -> [i,f,o,g]
        return jnp.concatenate([w[:2 * H], w[3 * H:4 * H], w[2 * H:3 * H]], axis=0)

    # ---- conv: stacked block-diagonal (kron) weights over taps -> (KW*C, C) ----
    wc = params["conv_w"][:, :, 0, :]                     # (ch_out, ch_in, KW)
    eye_w = jnp.eye(width, dtype=f32)
    wc_stack = jnp.concatenate(
        [jnp.kron(wc[:, :, k].T, eye_w) for k in range(KW)], axis=0).astype(bf16)
    bc = jnp.repeat(params["conv_b"], width).reshape(1, C)

    # ---- im2col input slab + residual slice (layout plumbing, done in XLA) ----
    x_flat = inputs.reshape(T_in * N, C)
    taps = [lax.dynamic_slice_in_dim(x_flat, k * N, TN, axis=0) for k in range(KW)]
    x_im2col = jnp.concatenate(taps, axis=1).astype(bf16)  # (TN, KW*C) MXU operand
    res = taps[KW - 1]                                      # (TN, C) f32 residual

    # ---- LSTM params: gate-reordered, direction-fused ----
    wih = jnp.concatenate([reorder_gates(params["w_ih_f"]).T,
                           reorder_gates(params["w_ih_b"]).T], axis=1).astype(bf16)
    bg = jnp.concatenate([reorder_gates(params["b_ih_f"] + params["b_hh_f"]),
                          reorder_gates(params["b_ih_b"] + params["b_hh_b"])]
                         ).reshape(1, 8 * H)
    whh_f = reorder_gates(params["w_hh_f"]).T              # (H, 4H)
    whh_b = reorder_gates(params["w_hh_b"]).T
    zpad = jnp.zeros((H, 4 * H), f32)
    whh_bd = jnp.concatenate(
        [jnp.concatenate([whh_f, zpad], axis=1),
         jnp.concatenate([zpad, whh_b], axis=1)], axis=0).astype(bf16)  # (2H, 8H)

    wp = params["proj_w"].T.astype(bf16)                    # (2H, C)
    bp = params["proj_b"].reshape(1, C)
    gamma = params["ln_w"].reshape(1, C)
    beta = params["ln_b"].reshape(1, C)

    # ---- VMEM limit: derive from hardware, leave headroom (v7x: 64 MiB/TC) ----
    try:
        cap = int(pltpu.get_tpu_info().vmem_capacity_bytes)
        vmem_limit = min(cap * 3 // 4, 96 * 1024 * 1024)
    except Exception:
        vmem_limit = 32 * 1024 * 1024

    kernel = functools.partial(_tds_cnn_lstm_kernel, n_batch=N)

    out_flat = pl.pallas_call(
        kernel,
        out_shape=jax.ShapeDtypeStruct((TN, C), jnp.float32),
        in_specs=[VMEM_SPEC] * 11,
        out_specs=VMEM_SPEC,
        scratch_shapes=[
            pltpu.VMEM((TN, C), f32),         # conv_out + residual (flat)
            pltpu.VMEM((TN, 4 * H), f32),     # hoisted fwd input gates
            pltpu.VMEM((TN, 4 * H), f32),     # hoisted bwd input gates
            pltpu.VMEM((TN, 2 * H), f32),     # [h_fwd | h_bwd]
        ],
        compiler_params=pltpu.CompilerParams(vmem_limit_bytes=vmem_limit),
    )(x_im2col, wc_stack, bc, res, wih, bg, whh_bd, wp, bp, gamma, beta)

    return out_flat.reshape(T_out, N, C)


# --------------------------- pure-JAX reference --------------------------------
def reference(inputs, params, channels, width, kernel_width, hidden_size):
    T_in, N, C = inputs.shape
    kw, H = kernel_width, hidden_size
    T_out = T_in - kw + 1
    x = jnp.transpose(inputs, (1, 2, 0)).reshape(N, channels, width, T_in)
    Wc, bc = params["conv_w"], params["conv_b"]
    y = jnp.zeros((N, channels, width, T_out), jnp.float32)
    for k in range(kw):
        y = y + jnp.einsum("ncwt,oc->nowt", x[..., k:k + T_out], Wc[:, :, 0, k])
    y = jnp.maximum(y + bc[None, :, None, None], 0.0)
    xc = jnp.moveaxis(y.reshape(N, C, T_out), -1, 0)        # (T_out, N, C)

    def run_lstm(xs, wih, whh, bih, bhh):
        def step(carry, x_t):
            h, c = carry
            g = x_t @ wih.T + h @ whh.T + bih + bhh
            i = jax.nn.sigmoid(g[:, :H]); f = jax.nn.sigmoid(g[:, H:2 * H])
            gg = jnp.tanh(g[:, 2 * H:3 * H]); o = jax.nn.sigmoid(g[:, 3 * H:])
            c = f * c + i * gg
            h = o * jnp.tanh(c)
            return (h, c), h
        init = (jnp.zeros((N, H), jnp.float32), jnp.zeros((N, H), jnp.float32))
        _, hs = lax.scan(step, init, xs)
        return hs

    hf = run_lstm(xc, params["w_ih_f"], params["w_hh_f"], params["b_ih_f"], params["b_hh_f"])
    hb = run_lstm(xc[::-1], params["w_ih_b"], params["w_hh_b"], params["b_ih_b"], params["b_hh_b"])[::-1]
    lstm_out = jnp.concatenate([hf, hb], axis=-1)
    p = lstm_out @ params["proj_w"].T + params["proj_b"]
    z = p + xc + inputs[T_in - T_out:]
    mean = z.mean(-1, keepdims=True)
    var = ((z - mean) ** 2).mean(-1, keepdims=True)
    return (z - mean) / jnp.sqrt(var + 1e-5) * params["ln_w"] + params["ln_b"]


if __name__ == "__main__":
    channels, width, kernel_width, hidden_size = 4, 8, 3, 16
    T_in, N = 8, 2
    C = channels * width
    H = hidden_size

    keys = jax.random.split(jax.random.PRNGKey(0), 13)
    s = 0.1
    params = {
        "conv_w": s * jax.random.normal(keys[0], (channels, channels, 1, kernel_width), jnp.float32),
        "conv_b": s * jax.random.normal(keys[1], (channels,), jnp.float32),
        "w_ih_f": s * jax.random.normal(keys[2], (4 * H, C), jnp.float32),
        "w_hh_f": s * jax.random.normal(keys[3], (4 * H, H), jnp.float32),
        "b_ih_f": s * jax.random.normal(keys[4], (4 * H,), jnp.float32),
        "b_hh_f": s * jax.random.normal(keys[5], (4 * H,), jnp.float32),
        "w_ih_b": s * jax.random.normal(keys[6], (4 * H, C), jnp.float32),
        "w_hh_b": s * jax.random.normal(keys[7], (4 * H, H), jnp.float32),
        "b_ih_b": s * jax.random.normal(keys[8], (4 * H,), jnp.float32),
        "b_hh_b": s * jax.random.normal(keys[9], (4 * H,), jnp.float32),
        "proj_w": s * jax.random.normal(keys[10], (C, 2 * H), jnp.float32),
        "proj_b": s * jax.random.normal(keys[11], (C,), jnp.float32),
        "ln_w": jnp.ones((C,), jnp.float32),   # PyTorch LayerNorm init
        "ln_b": jnp.zeros((C,), jnp.float32),
    }
    inputs = jax.random.normal(keys[12], (T_in, N, C), jnp.float32)

    out = tds_cnn_lstm_block(inputs, params, channels, width, kernel_width, hidden_size)
    out = jax.block_until_ready(out)

    ref = reference(inputs, params, channels, width, kernel_width, hidden_size)
    assert out.shape == (T_in - kernel_width + 1, N, C), out.shape
    np.testing.assert_allclose(np.asarray(out), np.asarray(ref), rtol=2e-2, atol=2e-2)
    print("KERNEL_OK")
</pallas_src>

<mosaic_0001>
module attributes {stable_mosaic.version = 11 : i64} {
  func.func @_tds_cnn_lstm_kernel(%arg0: memref<12x96xbf16, #tpu.memory_space<vmem>>, %arg1: memref<96x32xbf16, #tpu.memory_space<vmem>>, %arg2: memref<1x32xf32, #tpu.memory_space<vmem>>, %arg3: memref<12x32xf32, #tpu.memory_space<vmem>>, %arg4: memref<32x128xbf16, #tpu.memory_space<vmem>>, %arg5: memref<1x128xf32, #tpu.memory_space<vmem>>, %arg6: memref<32x128xbf16, #tpu.memory_space<vmem>>, %arg7: memref<32x32xbf16, #tpu.memory_space<vmem>>, %arg8: memref<1x32xf32, #tpu.memory_space<vmem>>, %arg9: memref<1x32xf32, #tpu.memory_space<vmem>>, %arg10: memref<1x32xf32, #tpu.memory_space<vmem>>, %arg11: memref<12x32xf32, #tpu.memory_space<vmem>>, %arg12: memref<12x32xf32, #tpu.memory_space<vmem>>, %arg13: memref<12x64xf32, #tpu.memory_space<vmem>>, %arg14: memref<12x64xf32, #tpu.memory_space<vmem>>, %arg15: memref<12x32xf32, #tpu.memory_space<vmem>>) attributes {dimension_semantics = [], scalar_prefetch = 0 : i64, scratch_operands = 4 : i64, tpu.core_type = #tpu.core_type<tc>} {
    %c0 = arith.constant 0 : index
    %c0_0 = arith.constant 0 : index
    %0 = vector.load %arg0[%c0, %c0_0] : memref<12x96xbf16, #tpu.memory_space<vmem>>, vector<12x96xbf16>
    %c0_1 = arith.constant 0 : index
    %c0_2 = arith.constant 0 : index
    %1 = vector.load %arg1[%c0_1, %c0_2] : memref<96x32xbf16, #tpu.memory_space<vmem>>, vector<96x32xbf16>
    %cst = arith.constant dense<0.000000e+00> : vector<12x32xf32>
    %2 = tpu.matmul %0, %1, %cst {dimension_numbers = #tpu.dot_dimension_numbers<[1], [0], [0], [1], [0, 0, 1, 1], [], []>} : vector<12x96xbf16>, vector<96x32xbf16>, vector<12x32xf32> -> vector<12x32xf32>
    %c0_3 = arith.constant 0 : index
    %c0_4 = arith.constant 0 : index
    %3 = vector.load %arg2[%c0_3, %c0_4] : memref<1x32xf32, #tpu.memory_space<vmem>>, vector<1x32xf32>
    %4 = vector.broadcast %3 : vector<1x32xf32> to vector<12x32xf32>
    %5 = arith.addf %2, %4 : vector<12x32xf32>
    %cst_5 = arith.constant 0.000000e+00 : f32
    %6 = vector.broadcast %cst_5 : f32 to vector<12x32xf32>
    %7 = arith.maximumf %5, %6 : vector<12x32xf32>
    %8 = arith.truncf %7 : vector<12x32xf32> to vector<12x32xbf16>
    %c0_6 = arith.constant 0 : index
    %c0_7 = arith.constant 0 : index
    %9 = vector.load %arg4[%c0_6, %c0_7] : memref<32x128xbf16, #tpu.memory_space<vmem>>, vector<32x128xbf16>
    %cst_8 = arith.constant dense<0.000000e+00> : vector<12x128xf32>
    %10 = tpu.matmul %8, %9, %cst_8 {dimension_numbers = #tpu.dot_dimension_numbers<[1], [0], [0], [1], [0, 0, 1, 1], [], []>} : vector<12x32xbf16>, vector<32x128xbf16>, vector<12x128xf32> -> vector<12x128xf32>
    %c0_9 = arith.constant 0 : index
    %c0_10 = arith.constant 0 : index
    %11 = vector.load %arg5[%c0_9, %c0_10] : memref<1x128xf32, #tpu.memory_space<vmem>>, vector<1x128xf32>
    %12 = vector.broadcast %11 : vector<1x128xf32> to vector<12x128xf32>
    %13 = arith.addf %10, %12 : vector<12x128xf32>
    %14 = vector.extract_strided_slice %13 {offsets = [0, 0], sizes = [12, 64], strides = [1, 1]} : vector<12x128xf32> to vector<12x64xf32>
    %c0_11 = arith.constant 0 : index
    %c0_12 = arith.constant 0 : index
    %15 = vector.load %arg13[%c0_11, %c0_12] : memref<12x64xf32, #tpu.memory_space<vmem>>, vector<12x64xf32>
    tpu.vector_store %arg13[%c0_11, %c0_12], %14 {strides = array<i32>} : memref<12x64xf32, #tpu.memory_space<vmem>>, vector<12x64xf32>,
    %16 = vector.extract_strided_slice %13 {offsets = [0, 64], sizes = [12, 64], strides = [1, 1]} : vector<12x128xf32> to vector<12x64xf32>
    %c0_13 = arith.constant 0 : index
    %c0_14 = arith.constant 0 : index
    %17 = vector.load %arg14[%c0_13, %c0_14] : memref<12x64xf32, #tpu.memory_space<vmem>>, vector<12x64xf32>
    tpu.vector_store %arg14[%c0_13, %c0_14], %16 {strides = array<i32>} : memref<12x64xf32, #tpu.memory_space<vmem>>, vector<12x64xf32>,
    %c0_15 = arith.constant 0 : index
    %c0_16 = arith.constant 0 : index
    %18 = vector.load %arg3[%c0_15, %c0_16] : memref<12x32xf32, #tpu.memory_space<vmem>>, vector<12x32xf32>
    %19 = arith.addf %7, %18 : vector<12x32xf32>
    %c0_17 = arith.constant 0 : index
    %c0_18 = arith.constant 0 : index
    %20 = vector.load %arg12[%c0_17, %c0_18] : memref<12x32xf32, #tpu.memory_space<vmem>>, vector<12x32xf32>
    tpu.vector_store %arg12[%c0_17, %c0_18], %19 {strides = array<i32>} : memref<12x32xf32, #tpu.memory_space<vmem>>, vector<12x32xf32>,
    %c0_19 = arith.constant 0 : index
    %c0_20 = arith.constant 0 : index
    %21 = vector.load %arg6[%c0_19, %c0_20] : memref<32x128xbf16, #tpu.memory_space<vmem>>, vector<32x128xbf16>
    %cst_21 = arith.constant 0.000000e+00 : f32
    %22 = vector.broadcast %cst_21 : f32 to vector<2x32xf32>
    %cst_22 = arith.constant 0.000000e+00 : f32
    %23 = vector.broadcast %cst_22 : f32 to vector<2x16xf32>
    %c0_i32 = arith.constant 0 : i32
    %c2_i32 = arith.constant 2 : i32
    %24 = arith.muli %c0_i32, %c2_i32 : i32
    %25 = tpu.assume_multiple %24, 2 : i32
    %c5_i32 = arith.constant 5 : i32
    %26 = arith.subi %c5_i32, %c0_i32 : i32
    %c2_i32_23 = arith.constant 2 : i32
    %27 = arith.muli %26, %c2_i32_23 : i32
    %28 = tpu.assume_multiple %27, 2 : i32
    %29 = arith.truncf %22 : vector<2x32xf32> to vector<2x32xbf16>
    %cst_24 = arith.constant dense<0.000000e+00> : vector<2x128xf32>
    %30 = tpu.matmul %29, %21, %cst_24 {dimension_numbers = #tpu.dot_dimension_numbers<[1], [0], [0], [1], [0, 0, 1, 1], [], []>} : vector<2x32xbf16>, vector<32x128xbf16>, vector<2x128xf32> -> vector<2x128xf32>
    %31 = arith.index_cast %25 : i32 to index
    %c0_25 = arith.constant 0 : index
    %32 = vector.load %arg13[%31, %c0_25] : memref<12x64xf32, #tpu.memory_space<vmem>>, vector<2x64xf32>
    %33 = vector.extract_strided_slice %30 {offsets = [0, 0], sizes = [2, 64], strides = [1, 1]} : vector<2x128xf32> to vector<2x64xf32>
    %34 = arith.addf %32, %33 : vector<2x64xf32>
    %35 = arith.index_cast %28 : i32 to index
    %c0_26 = arith.constant 0 : index
    %36 = vector.load %arg14[%35, %c0_26] : memref<12x64xf32, #tpu.memory_space<vmem>>, vector<2x64xf32>
    %37 = vector.extract_strided_slice %30 {offsets = [0, 64], sizes = [2, 64], strides = [1, 1]} : vector<2x128xf32> to vector<2x64xf32>
    %38 = arith.addf %36, %37 : vector<2x64xf32>
    %39 = vector.extract_strided_slice %34 {offsets = [0, 0], sizes = [2, 48], strides = [1, 1]} : vector<2x64xf32> to vector<2x48xf32>
    %40 = arith.negf %39 : vector<2x48xf32>
    %41 = math.exp %40 : vector<2x48xf32>
    %cst_27 = arith.constant 1.000000e+00 : f32
    %42 = vector.broadcast %cst_27 : f32 to vector<2x48xf32>
    %43 = arith.addf %42, %41 : vector<2x48xf32>
    %44 = arith.divf %42, %43 : vector<2x48xf32>
    %45 = vector.extract_strided_slice %38 {offsets = [0, 0], sizes = [2, 48], strides = [1, 1]} : vector<2x64xf32> to vector<2x48xf32>
    %46 = arith.negf %45 : vector<2x48xf32>
    %47 = math.exp %46 : vector<2x48xf32>
    %cst_28 = arith.constant 1.000000e+00 : f32
    %48 = vector.broadcast %cst_28 : f32 to vector<2x48xf32>
    %49 = arith.addf %48, %47 : vector<2x48xf32>
    %50 = arith.divf %48, %49 : vector<2x48xf32>
    %51 = vector.extract_strided_slice %34 {offsets = [0, 48], sizes = [2, 16], strides = [1, 1]} : vector<2x64xf32> to vector<2x16xf32>
    %52 = math.tanh %51 : vector<2x16xf32>
    %53 = vector.extract_strided_slice %38 {offsets = [0, 48], sizes = [2, 16], strides = [1, 1]} : vector<2x64xf32> to vector<2x16xf32>
    %54 = math.tanh %53 : vector<2x16xf32>
    %55 = vector.extract_strided_slice %44 {offsets = [0, 16], sizes = [2, 16], strides = [1, 1]} : vector<2x48xf32> to vector<2x16xf32>
    %56 = arith.mulf %55, %23 : vector<2x16xf32>
    %57 = vector.extract_strided_slice %44 {offsets = [0, 0], sizes = [2, 16], strides = [1, 1]} : vector<2x48xf32> to vector<2x16xf32>
    %58 = arith.mulf %57, %52 : vector<2x16xf32>
    %59 = arith.addf %56, %58 : vector<2x16xf32>
    %60 = vector.extract_strided_slice %50 {offsets = [0, 16], sizes = [2, 16], strides = [1, 1]} : vector<2x48xf32> to vector<2x16xf32>
    %61 = arith.mulf %60, %23 : vector<2x16xf32>
    %62 = vector.extract_strided_slice %50 {offsets = [0, 0], sizes = [2, 16], strides = [1, 1]} : vector<2x48xf32> to vector<2x16xf32>
    %63 = arith.mulf %62, %54 : vector<2x16xf32>
    %64 = arith.addf %61, %63 : vector<2x16xf32>
    %65 = vector.extract_strided_slice %44 {offsets = [0, 32], sizes = [2, 16], strides = [1, 1]} : vector<2x48xf32> to vector<2x16xf32>
    %66 = math.tanh %59 : vector<2x16xf32>
    %67 = arith.mulf %65, %66 : vector<2x16xf32>
    %68 = vector.extract_strided_slice %50 {offsets = [0, 32], sizes = [2, 16], strides = [1, 1]} : vector<2x48xf32> to vector<2x16xf32>
    %69 = math.tanh %64 : vector<2x16xf32>
    %70 = arith.mulf %68, %69 : vector<2x16xf32>
    %71 = arith.index_cast %25 : i32 to index
    %c0_29 = arith.constant 0 : index
    %72 = vector.load %arg15[%71, %c0_29] : memref<12x32xf32, #tpu.memory_space<vmem>>, vector<2x16xf32>
    tpu.vector_store %arg15[%71, %c0_29], %67 {strides = array<i32>} : memref<12x32xf32, #tpu.memory_space<vmem>>, vector<2x16xf32>,
    %73 = arith.index_cast %28 : i32 to index
    %c16 = arith.constant 16 : index
    %74 = vector.load %arg15[%73, %c16] : memref<12x32xf32, #tpu.memory_space<vmem>>, vector<2x16xf32>
    tpu.vector_store %arg15[%73, %c16], %70 {strides = array<i32>} : memref<12x32xf32, #tpu.memory_space<vmem>>, vector<2x16xf32>,
    %75 = tpu.concatenate %67, %70 in 1 : vector<2x16xf32>, vector<2x16xf32> -> vector<2x32xf32>
    %c1_i32 = arith.constant 1 : i32
    %c2_i32_30 = arith.constant 2 : i32
    %76 = arith.muli %c1_i32, %c2_i32_30 : i32
    %77 = tpu.assume_multiple %76, 2 : i32
    %c5_i32_31 = arith.constant 5 : i32
    %78 = arith.subi %c5_i32_31, %c1_i32 : i32
    %c2_i32_32 = arith.constant 2 : i32
    %79 = arith.muli %78, %c2_i32_32 : i32
    %80 = tpu.assume_multiple %79, 2 : i32
    %81 = arith.truncf %75 : vector<2x32xf32> to vector<2x32xbf16>
    %cst_33 = arith.constant dense<0.000000e+00> : vector<2x128xf32>
    %82 = tpu.matmul %81, %21, %cst_33 {dimension_numbers = #tpu.dot_dimension_numbers<[1], [0], [0], [1], [0, 0, 1, 1], [], []>} : vector<2x32xbf16>, vector<32x128xbf16>, vector<2x128xf32> -> vector<2x128xf32>
    %83 = arith.index_cast %77 : i32 to index
    %c0_34 = arith.constant 0 : index
    %84 = vector.load %arg13[%83, %c0_34] : memref<12x64xf32, #tpu.memory_space<vmem>>, vector<2x64xf32>
    %85 = vector.extract_strided_slice %82 {offsets = [0, 0], sizes = [2, 64], strides = [1, 1]} : vector<2x128xf32> to vector<2x64xf32>
    %86 = arith.addf %84, %85 : vector<2x64xf32>
    %87 = arith.index_cast %80 : i32 to index
    %c0_35 = arith.constant 0 : index
    %88 = vector.load %arg14[%87, %c0_35] : memref<12x64xf32, #tpu.memory_space<vmem>>, vector<2x64xf32>
    %89 = vector.extract_strided_slice %82 {offsets = [0, 64], sizes = [2, 64], strides = [1, 1]} : vector<2x128xf32> to vector<2x64xf32>
    %90 = arith.addf %88, %89 : vector<2x64xf32>
    %91 = vector.extract_strided_slice %86 {offsets = [0, 0], sizes = [2, 48], strides = [1, 1]} : vector<2x64xf32> to vector<2x48xf32>
    %92 = arith.negf %91 : vector<2x48xf32>
    %93 = math.exp %92 : vector<2x48xf32>
    %cst_36 = arith.constant 1.000000e+00 : f32
    %94 = vector.broadcast %cst_36 : f32 to vector<2x48xf32>
    %95 = arith.addf %94, %93 : vector<2x48xf32>
    %96 = arith.divf %94, %95 : vector<2x48xf32>
    %97 = vector.extract_strided_slice %90 {offsets = [0, 0], sizes = [2, 48], strides = [1, 1]} : vector<2x64xf32> to vector<2x48xf32>
    %98 = arith.negf %97 : vector<2x48xf32>
    %99 = math.exp %98 : vector<2x48xf32>
    %cst_37 = arith.constant 1.000000e+00 : f32
    %100 = vector.broadcast %cst_37 : f32 to vector<2x48xf32>
    %101 = arith.addf %100, %99 : vector<2x48xf32>
    %102 = arith.divf %100, %101 : vector<2x48xf32>
    %103 = vector.extract_strided_slice %86 {offsets = [0, 48], sizes = [2, 16], strides = [1, 1]} : vector<2x64xf32> to vector<2x16xf32>
    %104 = math.tanh %103 : vector<2x16xf32>
    %105 = vector.extract_strided_slice %90 {offsets = [0, 48], sizes = [2, 16], strides = [1, 1]} : vector<2x64xf32> to vector<2x16xf32>
    %106 = math.tanh %105 : vector<2x16xf32>
    %107 = vector.extract_strided_slice %96 {offsets = [0, 16], sizes = [2, 16], strides = [1, 1]} : vector<2x48xf32> to vector<2x16xf32>
    %108 = arith.mulf %107, %59 : vector<2x16xf32>
    %109 = vector.extract_strided_slice %96 {offsets = [0, 0], sizes = [2, 16], strides = [1, 1]} : vector<2x48xf32> to vector<2x16xf32>
    %110 = arith.mulf %109, %104 : vector<2x16xf32>
    %111 = arith.addf %108, %110 : vector<2x16xf32>
    %112 = vector.extract_strided_slice %102 {offsets = [0, 16], sizes = [2, 16], strides = [1, 1]} : vector<2x48xf32> to vector<2x16xf32>
    %113 = arith.mulf %112, %64 : vector<2x16xf32>
    %114 = vector.extract_strided_slice %102 {offsets = [0, 0], sizes = [2, 16], strides = [1, 1]} : vector<2x48xf32> to vector<2x16xf32>
    %115 = arith.mulf %114, %106 : vector<2x16xf32>
    %116 = arith.addf %113, %115 : vector<2x16xf32>
    %117 = vector.extract_strided_slice %96 {offsets = [0, 32], sizes = [2, 16], strides = [1, 1]} : vector<2x48xf32> to vector<2x16xf32>
    %118 = math.tanh %111 : vector<2x16xf32>
    %119 = arith.mulf %117, %118 : vector<2x16xf32>
    %120 = vector.extract_strided_slice %102 {offsets = [0, 32], sizes = [2, 16], strides = [1, 1]} : vector<2x48xf32> to vector<2x16xf32>
    %121 = math.tanh %116 : vector<2x16xf32>
    %122 = arith.mulf %120, %121 : vector<2x16xf32>
    %123 = arith.index_cast %77 : i32 to index
    %c0_38 = arith.constant 0 : index
    %124 = vector.load %arg15[%123, %c0_38] : memref<12x32xf32, #tpu.memory_space<vmem>>, vector<2x16xf32>
    tpu.vector_store %arg15[%123, %c0_38], %119 {strides = array<i32>} : memref<12x32xf32, #tpu.memory_space<vmem>>, vector<2x16xf32>,
    %125 = arith.index_cast %80 : i32 to index
    %c16_39 = arith.constant 16 : index
    %126 = vector.load %arg15[%125, %c16_39] : memref<12x32xf32, #tpu.memory_space<vmem>>, vector<2x16xf32>
    tpu.vector_store %arg15[%125, %c16_39], %122 {strides = array<i32>} : memref<12x32xf32, #tpu.memory_space<vmem>>, vector<2x16xf32>,
    %127 = tpu.concatenate %119, %122 in 1 : vector<2x16xf32>, vector<2x16xf32> -> vector<2x32xf32>
    %c2_i32_40 = arith.constant 2 : i32
    %c2_i32_41 = arith.constant 2 : i32
    %128 = arith.muli %c2_i32_40, %c2_i32_41 : i32
    %129 = tpu.assume_multiple %128, 2 : i32
    %c5_i32_42 = arith.constant 5 : i32
    %130 = arith.subi %c5_i32_42, %c2_i32_40 : i32
    %c2_i32_43 = arith.constant 2 : i32
    %131 = arith.muli %130, %c2_i32_43 : i32
    %132 = tpu.assume_multiple %131, 2 : i32
    %133 = arith.truncf %127 : vector<2x32xf32> to vector<2x32xbf16>
    %cst_44 = arith.constant dense<0.000000e+00> : vector<2x128xf32>
    %134 = tpu.matmul %133, %21, %cst_44 {dimension_numbers = #tpu.dot_dimension_numbers<[1], [0], [0], [1], [0, 0, 1, 1], [], []>} : vector<2x32xbf16>, vector<32x128xbf16>, vector<2x128xf32> -> vector<2x128xf32>
    %135 = arith.index_cast %129 : i32 to index
    %c0_45 = arith.constant 0 : index
    %136 = vector.load %arg13[%135, %c0_45] : memref<12x64xf32, #tpu.memory_space<vmem>>, vector<2x64xf32>
    %137 = vector.extract_strided_slice %134 {offsets = [0, 0], sizes = [2, 64], strides = [1, 1]} : vector<2x128xf32> to vector<2x64xf32>
    %138 = arith.addf %136, %137 : vector<2x64xf32>
    %139 = arith.index_cast %132 : i32 to index
    %c0_46 = arith.constant 0 : index
    %140 = vector.load %arg14[%139, %c0_46] : memref<12x64xf32, #tpu.memory_space<vmem>>, vector<2x64xf32>
    %141 = vector.extract_strided_slice %134 {offsets = [0, 64], sizes = [2, 64], strides = [1, 1]} : vector<2x128xf32> to vector<2x64xf32>
    %142 = arith.addf %140, %141 : vector<2x64xf32>
    %143 = vector.extract_strided_slice %138 {offsets = [0, 0], sizes = [2, 48], strides = [1, 1]} : vector<2x64xf32> to vector<2x48xf32>
    %144 = arith.negf %143 : vector<2x48xf32>
    %145 = math.exp %144 : vector<2x48xf32>
    %cst_47 = arith.constant 1.000000e+00 : f32
    %146 = vector.broadcast %cst_47 : f32 to vector<2x48xf32>
    %147 = arith.addf %146, %145 : vector<2x48xf32>
    %148 = arith.divf %146, %147 : vector<2x48xf32>
    %149 = vector.extract_strided_slice %142 {offsets = [0, 0], sizes = [2, 48], strides = [1, 1]} : vector<2x64xf32> to vector<2x48xf32>
    %150 = arith.negf %149 : vector<2x48xf32>
    %151 = math.exp %150 : vector<2x48xf32>
    %cst_48 = arith.constant 1.000000e+00 : f32
    %152 = vector.broadcast %cst_48 : f32 to vector<2x48xf32>
    %153 = arith.addf %152, %151 : vector<2x48xf32>
    %154 = arith.divf %152, %153 : vector<2x48xf32>
    %155 = vector.extract_strided_slice %138 {offsets = [0, 48], sizes = [2, 16], strides = [1, 1]} : vector<2x64xf32> to vector<2x16xf32>
    %156 = math.tanh %155 : vector<2x16xf32>
    %157 = vector.extract_strided_slice %142 {offsets = [0, 48], sizes = [2, 16], strides = [1, 1]} : vector<2x64xf32> to vector<2x16xf32>
    %158 = math.tanh %157 : vector<2x16xf32>
    %159 = vector.extract_strided_slice %148 {offsets = [0, 16], sizes = [2, 16], strides = [1, 1]} : vector<2x48xf32> to vector<2x16xf32>
    %160 = arith.mulf %159, %111 : vector<2x16xf32>
    %161 = vector.extract_strided_slice %148 {offsets = [0, 0], sizes = [2, 16], strides = [1, 1]} : vector<2x48xf32> to vector<2x16xf32>
    %162 = arith.mulf %161, %156 : vector<2x16xf32>
    %163 = arith.addf %160, %162 : vector<2x16xf32>
    %164 = vector.extract_strided_slice %154 {offsets = [0, 16], sizes = [2, 16], strides = [1, 1]} : vector<2x48xf32> to vector<2x16xf32>
    %165 = arith.mulf %164, %116 : vector<2x16xf32>
    %166 = vector.extract_strided_slice %154 {offsets = [0, 0], sizes = [2, 16], strides = [1, 1]} : vector<2x48xf32> to vector<2x16xf32>
    %167 = arith.mulf %166, %158 : vector<2x16xf32>
    %168 = arith.addf %165, %167 : vector<2x16xf32>
    %169 = vector.extract_strided_slice %148 {offsets = [0, 32], sizes = [2, 16], strides = [1, 1]} : vector<2x48xf32> to vector<2x16xf32>
    %170 = math.tanh %163 : vector<2x16xf32>
    %171 = arith.mulf %169, %170 : vector<2x16xf32>
    %172 = vector.extract_strided_slice %154 {offsets = [0, 32], sizes = [2, 16], strides = [1, 1]} : vector<2x48xf32> to vector<2x16xf32>
    %173 = math.tanh %168 : vector<2x16xf32>
    %174 = arith.mulf %172, %173 : vector<2x16xf32>
    %175 = arith.index_cast %129 : i32 to index
    %c0_49 = arith.constant 0 : index
    %176 = vector.load %arg15[%175, %c0_49] : memref<12x32xf32, #tpu.memory_space<vmem>>, vector<2x16xf32>
    tpu.vector_store %arg15[%175, %c0_49], %171 {strides = array<i32>} : memref<12x32xf32, #tpu.memory_space<vmem>>, vector<2x16xf32>,
    %177 = arith.index_cast %132 : i32 to index
    %c16_50 = arith.constant 16 : index
    %178 = vector.load %arg15[%177, %c16_50] : memref<12x32xf32, #tpu.memory_space<vmem>>, vector<2x16xf32>
    tpu.vector_store %arg15[%177, %c16_50], %174 {strides = array<i32>} : memref<12x32xf32, #tpu.memory_space<vmem>>, vector<2x16xf32>,
    %179 = tpu.concatenate %171, %174 in 1 : vector<2x16xf32>, vector<2x16xf32> -> vector<2x32xf32>
    %c3_i32 = arith.constant 3 : i32
    %c2_i32_51 = arith.constant 2 : i32
    %180 = arith.muli %c3_i32, %c2_i32_51 : i32
    %181 = tpu.assume_multiple %180, 2 : i32
    %c5_i32_52 = arith.constant 5 : i32
    %182 = arith.subi %c5_i32_52, %c3_i32 : i32
    %c2_i32_53 = arith.constant 2 : i32
    %183 = arith.muli %182, %c2_i32_53 : i32
    %184 = tpu.assume_multiple %183, 2 : i32
    %185 = arith.truncf %179 : vector<2x32xf32> to vector<2x32xbf16>
    %cst_54 = arith.constant dense<0.000000e+00> : vector<2x128xf32>
    %186 = tpu.matmul %185, %21, %cst_54 {dimension_numbers = #tpu.dot_dimension_numbers<[1], [0], [0], [1], [0, 0, 1, 1], [], []>} : vector<2x32xbf16>, vector<32x128xbf16>, vector<2x128xf32> -> vector<2x128xf32>
    %187 = arith.index_cast %181 : i32 to index
    %c0_55 = arith.constant 0 : index
    %188 = vector.load %arg13[%187, %c0_55] : memref<12x64xf32, #tpu.memory_space<vmem>>, vector<2x64xf32>
    %189 = vector.extract_strided_slice %186 {offsets = [0, 0], sizes = [2, 64], strides = [1, 1]} : vector<2x128xf32> to vector<2x64xf32>
    %190 = arith.addf %188, %189 : vector<2x64xf32>
    %191 = arith.index_cast %184 : i32 to index
    %c0_56 = arith.constant 0 : index
    %192 = vector.load %arg14[%191, %c0_56] : memref<12x64xf32, #tpu.memory_space<vmem>>, vector<2x64xf32>
    %193 = vector.extract_strided_slice %186 {offsets = [0, 64], sizes = [2, 64], strides = [1, 1]} : vector<2x128xf32> to vector<2x64xf32>
    %194 = arith.addf %192, %193 : vector<2x64xf32>
    %195 = vector.extract_strided_slice %190 {offsets = [0, 0], sizes = [2, 48], strides = [1, 1]} : vector<2x64xf32> to vector<2x48xf32>
    %196 = arith.negf %195 : vector<2x48xf32>
    %197 = math.exp %196 : vector<2x48xf32>
    %cst_57 = arith.constant 1.000000e+00 : f32
    %198 = vector.broadcast %cst_57 : f32 to vector<2x48xf32>
    %199 = arith.addf %198, %197 : vector<2x48xf32>
    %200 = arith.divf %198, %199 : vector<2x48xf32>
    %201 = vector.extract_strided_slice %194 {offsets = [0, 0], sizes = [2, 48], strides = [1, 1]} : vector<2x64xf32> to vector<2x48xf32>
    %202 = arith.negf %201 : vector<2x48xf32>
    %203 = math.exp %202 : vector<2x48xf32>
    %cst_58 = arith.constant 1.000000e+00 : f32
    %204 = vector.broadcast %cst_58 : f32 to vector<2x48xf32>
    %205 = arith.addf %204, %203 : vector<2x48xf32>
    %206 = arith.divf %204, %205 : vector<2x48xf32>
    %207 = vector.extract_strided_slice %190 {offsets = [0, 48], sizes = [2, 16], strides = [1, 1]} : vector<2x64xf32> to vector<2x16xf32>
    %208 = math.tanh %207 : vector<2x16xf32>
    %209 = vector.extract_strided_slice %194 {offsets = [0, 48], sizes = [2, 16], strides = [1, 1]} : vector<2x64xf32> to vector<2x16xf32>
    %210 = math.tanh %209 : vector<2x16xf32>
    %211 = vector.extract_strided_slice %200 {offsets = [0, 16], sizes = [2, 16], strides = [1, 1]} : vector<2x48xf32> to vector<2x16xf32>
    %212 = arith.mulf %211, %163 : vector<2x16xf32>
    %213 = vector.extract_strided_slice %200 {offsets = [0, 0], sizes = [2, 16], strides = [1, 1]} : vector<2x48xf32> to vector<2x16xf32>
    %214 = arith.mulf %213, %208 : vector<2x16xf32>
    %215 = arith.addf %212, %214 : vector<2x16xf32>
    %216 = vector.extract_strided_slice %206 {offsets = [0, 16], sizes = [2, 16], strides = [1, 1]} : vector<2x48xf32> to vector<2x16xf32>
    %217 = arith.mulf %216, %168 : vector<2x16xf32>
    %218 = vector.extract_strided_slice %206 {offsets = [0, 0], sizes = [2, 16], strides = [1, 1]} : vector<2x48xf32> to vector<2x16xf32>
    %219 = arith.mulf %218, %210 : vector<2x16xf32>
    %220 = arith.addf %217, %219 : vector<2x16xf32>
    %221 = vector.extract_strided_slice %200 {offsets = [0, 32], sizes = [2, 16], strides = [1, 1]} : vector<2x48xf32> to vector<2x16xf32>
    %222 = math.tanh %215 : vector<2x16xf32>
    %223 = arith.mulf %221, %222 : vector<2x16xf32>
    %224 = vector.extract_strided_slice %206 {offsets = [0, 32], sizes = [2, 16], strides = [1, 1]} : vector<2x48xf32> to vector<2x16xf32>
    %225 = math.tanh %220 : vector<2x16xf32>
    %226 = arith.mulf %224, %225 : vector<2x16xf32>
    %227 = arith.index_cast %181 : i32 to index
    %c0_59 = arith.constant 0 : index
    %228 = vector.load %arg15[%227, %c0_59] : memref<12x32xf32, #tpu.memory_space<vmem>>, vector<2x16xf32>
    tpu.vector_store %arg15[%227, %c0_59], %223 {strides = array<i32>} : memref<12x32xf32, #tpu.memory_space<vmem>>, vector<2x16xf32>,
    %229 = arith.index_cast %184 : i32 to index
    %c16_60 = arith.constant 16 : index
    %230 = vector.load %arg15[%229, %c16_60] : memref<12x32xf32, #tpu.memory_space<vmem>>, vector<2x16xf32>
    tpu.vector_store %arg15[%229, %c16_60], %226 {strides = array<i32>} : memref<12x32xf32, #tpu.memory_space<vmem>>, vector<2x16xf32>,
    %231 = tpu.concatenate %223, %226 in 1 : vector<2x16xf32>, vector<2x16xf32> -> vector<2x32xf32>
    %c4_i32 = arith.constant 4 : i32
    %c2_i32_61 = arith.constant 2 : i32
    %232 = arith.muli %c4_i32, %c2_i32_61 : i32
    %233 = tpu.assume_multiple %232, 2 : i32
    %c5_i32_62 = arith.constant 5 : i32
    %234 = arith.subi %c5_i32_62, %c4_i32 : i32
    %c2_i32_63 = arith.constant 2 : i32
    %235 = arith.muli %234, %c2_i32_63 : i32
    %236 = tpu.assume_multiple %235, 2 : i32
    %237 = arith.truncf %231 : vector<2x32xf32> to vector<2x32xbf16>
    %cst_64 = arith.constant dense<0.000000e+00> : vector<2x128xf32>
    %238 = tpu.matmul %237, %21, %cst_64 {dimension_numbers = #tpu.dot_dimension_numbers<[1], [0], [0], [1], [0, 0, 1, 1], [], []>} : vector<2x32xbf16>, vector<32x128xbf16>, vector<2x128xf32> -> vector<2x128xf32>
    %239 = arith.index_cast %233 : i32 to index
    %c0_65 = arith.constant 0 : index
    %240 = vector.load %arg13[%239, %c0_65] : memref<12x64xf32, #tpu.memory_space<vmem>>, vector<2x64xf32>
    %241 = vector.extract_strided_slice %238 {offsets = [0, 0], sizes = [2, 64], strides = [1, 1]} : vector<2x128xf32> to vector<2x64xf32>
    %242 = arith.addf %240, %241 : vector<2x64xf32>
    %243 = arith.index_cast %236 : i32 to index
    %c0_66 = arith.constant 0 : index
    %244 = vector.load %arg14[%243, %c0_66] : memref<12x64xf32, #tpu.memory_space<vmem>>, vector<2x64xf32>
    %245 = vector.extract_strided_slice %238 {offsets = [0, 64], sizes = [2, 64], strides = [1, 1]} : vector<2x128xf32> to vector<2x64xf32>
    %246 = arith.addf %244, %245 : vector<2x64xf32>
    %247 = vector.extract_strided_slice %242 {offsets = [0, 0], sizes = [2, 48], strides = [1, 1]} : vector<2x64xf32> to vector<2x48xf32>
    %248 = arith.negf %247 : vector<2x48xf32>
    %249 = math.exp %248 : vector<2x48xf32>
    %cst_67 = arith.constant 1.000000e+00 : f32
    %250 = vector.broadcast %cst_67 : f32 to vector<2x48xf32>
    %251 = arith.addf %250, %249 : vector<2x48xf32>
    %252 = arith.divf %250, %251 : vector<2x48xf32>
    %253 = vector.extract_strided_slice %246 {offsets = [0, 0], sizes = [2, 48], strides = [1, 1]} : vector<2x64xf32> to vector<2x48xf32>
    %254 = arith.negf %253 : vector<2x48xf32>
    %255 = math.exp %254 : vector<2x48xf32>
    %cst_68 = arith.constant 1.000000e+00 : f32
    %256 = vector.broadcast %cst_68 : f32 to vector<2x48xf32>
    %257 = arith.addf %256, %255 : vector<2x48xf32>
    %258 = arith.divf %256, %257 : vector<2x48xf32>
    %259 = vector.extract_strided_slice %242 {offsets = [0, 48], sizes = [2, 16], strides = [1, 1]} : vector<2x64xf32> to vector<2x16xf32>
    %260 = math.tanh %259 : vector<2x16xf32>
    %261 = vector.extract_strided_slice %246 {offsets = [0, 48], sizes = [2, 16], strides = [1, 1]} : vector<2x64xf32> to vector<2x16xf32>
    %262 = math.tanh %261 : vector<2x16xf32>
    %263 = vector.extract_strided_slice %252 {offsets = [0, 16], sizes = [2, 16], strides = [1, 1]} : vector<2x48xf32> to vector<2x16xf32>
    %264 = arith.mulf %263, %215 : vector<2x16xf32>
    %265 = vector.extract_strided_slice %252 {offsets = [0, 0], sizes = [2, 16], strides = [1, 1]} : vector<2x48xf32> to vector<2x16xf32>
    %266 = arith.mulf %265, %260 : vector<2x16xf32>
    %267 = arith.addf %264, %266 : vector<2x16xf32>
    %268 = vector.extract_strided_slice %258 {offsets = [0, 16], sizes = [2, 16], strides = [1, 1]} : vector<2x48xf32> to vector<2x16xf32>
    %269 = arith.mulf %268, %220 : vector<2x16xf32>
    %270 = vector.extract_strided_slice %258 {offsets = [0, 0], sizes = [2, 16], strides = [1, 1]} : vector<2x48xf32> to vector<2x16xf32>
    %271 = arith.mulf %270, %262 : vector<2x16xf32>
    %272 = arith.addf %269, %271 : vector<2x16xf32>
    %273 = vector.extract_strided_slice %252 {offsets = [0, 32], sizes = [2, 16], strides = [1, 1]} : vector<2x48xf32> to vector<2x16xf32>
    %274 = math.tanh %267 : vector<2x16xf32>
    %275 = arith.mulf %273, %274 : vector<2x16xf32>
    %276 = vector.extract_strided_slice %258 {offsets = [0, 32], sizes = [2, 16], strides = [1, 1]} : vector<2x48xf32> to vector<2x16xf32>
    %277 = math.tanh %272 : vector<2x16xf32>
    %278 = arith.mulf %276, %277 : vector<2x16xf32>
    %279 = arith.index_cast %233 : i32 to index
    %c0_69 = arith.constant 0 : index
    %280 = vector.load %arg15[%279, %c0_69] : memref<12x32xf32, #tpu.memory_space<vmem>>, vector<2x16xf32>
    tpu.vector_store %arg15[%279, %c0_69], %275 {strides = array<i32>} : memref<12x32xf32, #tpu.memory_space<vmem>>, vector<2x16xf32>,
    %281 = arith.index_cast %236 : i32 to index
    %c16_70 = arith.constant 16 : index
    %282 = vector.load %arg15[%281, %c16_70] : memref<12x32xf32, #tpu.memory_space<vmem>>, vector<2x16xf32>
    tpu.vector_store %arg15[%281, %c16_70], %278 {strides = array<i32>} : memref<12x32xf32, #tpu.memory_space<vmem>>, vector<2x16xf32>,
    %283 = tpu.concatenate %275, %278 in 1 : vector<2x16xf32>, vector<2x16xf32> -> vector<2x32xf32>
    %c5_i32_71 = arith.constant 5 : i32
    %c2_i32_72 = arith.constant 2 : i32
    %284 = arith.muli %c5_i32_71, %c2_i32_72 : i32
    %285 = tpu.assume_multiple %284, 2 : i32
    %c5_i32_73 = arith.constant 5 : i32
    %286 = arith.subi %c5_i32_73, %c5_i32_71 : i32
    %c2_i32_74 = arith.constant 2 : i32
    %287 = arith.muli %286, %c2_i32_74 : i32
    %288 = tpu.assume_multiple %287, 2 : i32
    %289 = arith.truncf %283 : vector<2x32xf32> to vector<2x32xbf16>
    %cst_75 = arith.constant dense<0.000000e+00> : vector<2x128xf32>
    %290 = tpu.matmul %289, %21, %cst_75 {dimension_numbers = #tpu.dot_dimension_numbers<[1], [0], [0], [1], [0, 0, 1, 1], [], []>} : vector<2x32xbf16>, vector<32x128xbf16>, vector<2x128xf32> -> vector<2x128xf32>
    %291 = arith.index_cast %285 : i32 to index
    %c0_76 = arith.constant 0 : index
    %292 = vector.load %arg13[%291, %c0_76] : memref<12x64xf32, #tpu.memory_space<vmem>>, vector<2x64xf32>
    %293 = vector.extract_strided_slice %290 {offsets = [0, 0], sizes = [2, 64], strides = [1, 1]} : vector<2x128xf32> to vector<2x64xf32>
    %294 = arith.addf %292, %293 : vector<2x64xf32>
    %295 = arith.index_cast %288 : i32 to index
    %c0_77 = arith.constant 0 : index
    %296 = vector.load %arg14[%295, %c0_77] : memref<12x64xf32, #tpu.memory_space<vmem>>, vector<2x64xf32>
    %297 = vector.extract_strided_slice %290 {offsets = [0, 64], sizes = [2, 64], strides = [1, 1]} : vector<2x128xf32> to vector<2x64xf32>
    %298 = arith.addf %296, %297 : vector<2x64xf32>
    %299 = vector.extract_strided_slice %294 {offsets = [0, 0], sizes = [2, 48], strides = [1, 1]} : vector<2x64xf32> to vector<2x48xf32>
    %300 = arith.negf %299 : vector<2x48xf32>
    %301 = math.exp %300 : vector<2x48xf32>
    %cst_78 = arith.constant 1.000000e+00 : f32
    %302 = vector.broadcast %cst_78 : f32 to vector<2x48xf32>
    %303 = arith.addf %302, %301 : vector<2x48xf32>
    %304 = arith.divf %302, %303 : vector<2x48xf32>
    %305 = vector.extract_strided_slice %298 {offsets = [0, 0], sizes = [2, 48], strides = [1, 1]} : vector<2x64xf32> to vector<2x48xf32>
    %306 = arith.negf %305 : vector<2x48xf32>
    %307 = math.exp %306 : vector<2x48xf32>
    %cst_79 = arith.constant 1.000000e+00 : f32
    %308 = vector.broadcast %cst_79 : f32 to vector<2x48xf32>
    %309 = arith.addf %308, %307 : vector<2x48xf32>
    %310 = arith.divf %308, %309 : vector<2x48xf32>
    %311 = vector.extract_strided_slice %294 {offsets = [0, 48], sizes = [2, 16], strides = [1, 1]} : vector<2x64xf32> to vector<2x16xf32>
    %312 = math.tanh %311 : vector<2x16xf32>
    %313 = vector.extract_strided_slice %298 {offsets = [0, 48], sizes = [2, 16], strides = [1, 1]} : vector<2x64xf32> to vector<2x16xf32>
    %314 = math.tanh %313 : vector<2x16xf32>
    %315 = vector.extract_strided_slice %304 {offsets = [0, 16], sizes = [2, 16], strides = [1, 1]} : vector<2x48xf32> to vector<2x16xf32>
    %316 = arith.mulf %315, %267 : vector<2x16xf32>
    %317 = vector.extract_strided_slice %304 {offsets = [0, 0], sizes = [2, 16], strides = [1, 1]} : vector<2x48xf32> to vector<2x16xf32>
    %318 = arith.mulf %317, %312 : vector<2x16xf32>
    %319 = arith.addf %316, %318 : vector<2x16xf32>
    %320 = vector.extract_strided_slice %310 {offsets = [0, 16], sizes = [2, 16], strides = [1, 1]} : vector<2x48xf32> to vector<2x16xf32>
    %321 = arith.mulf %320, %272 : vector<2x16xf32>
    %322 = vector.extract_strided_slice %310 {offsets = [0, 0], sizes = [2, 16], strides = [1, 1]} : vector<2x48xf32> to vector<2x16xf32>
    %323 = arith.mulf %322, %314 : vector<2x16xf32>
    %324 = arith.addf %321, %323 : vector<2x16xf32>
    %325 = vector.extract_strided_slice %304 {offsets = [0, 32], sizes = [2, 16], strides = [1, 1]} : vector<2x48xf32> to vector<2x16xf32>
    %326 = math.tanh %319 : vector<2x16xf32>
    %327 = arith.mulf %325, %326 : vector<2x16xf32>
    %328 = vector.extract_strided_slice %310 {offsets = [0, 32], sizes = [2, 16], strides = [1, 1]} : vector<2x48xf32> to vector<2x16xf32>
    %329 = math.tanh %324 : vector<2x16xf32>
    %330 = arith.mulf %328, %329 : vector<2x16xf32>
    %331 = arith.index_cast %285 : i32 to index
    %c0_80 = arith.constant 0 : index
    %332 = vector.load %arg15[%331, %c0_80] : memref<12x32xf32, #tpu.memory_space<vmem>>, vector<2x16xf32>
    tpu.vector_store %arg15[%331, %c0_80], %327 {strides = array<i32>} : memref<12x32xf32, #tpu.memory_space<vmem>>, vector<2x16xf32>,
    %333 = arith.index_cast %288 : i32 to index
    %c16_81 = arith.constant 16 : index
    %334 = vector.load %arg15[%333, %c16_81] : memref<12x32xf32, #tpu.memory_space<vmem>>, vector<2x16xf32>
    tpu.vector_store %arg15[%333, %c16_81], %330 {strides = array<i32>} : memref<12x32xf32, #tpu.memory_space<vmem>>, vector<2x16xf32>,
    %335 = tpu.concatenate %327, %330 in 1 : vector<2x16xf32>, vector<2x16xf32> -> vector<2x32xf32>
    %c6_i32 = arith.constant 6 : i32
    %c0_82 = arith.constant 0 : index
    %c0_83 = arith.constant 0 : index
    %336 = vector.load %arg15[%c0_82, %c0_83] : memref<12x32xf32, #tpu.memory_space<vmem>>, vector<12x32xf32>
    %337 = arith.truncf %336 : vector<12x32xf32> to vector<12x32xbf16>
    %c0_84 = arith.constant 0 : index
    %c0_85 = arith.constant 0 : index
    %338 = vector.load %arg7[%c0_84, %c0_85] : memref<32x32xbf16, #tpu.memory_space<vmem>>, vector<32x32xbf16>
    %cst_86 = arith.constant dense<0.000000e+00> : vector<12x32xf32>
    %339 = tpu.matmul %337, %338, %cst_86 {dimension_numbers = #tpu.dot_dimension_numbers<[1], [0], [0], [1], [0, 0, 1, 1], [], []>} : vector<12x32xbf16>, vector<32x32xbf16>, vector<12x32xf32> -> vector<12x32xf32>
    %c0_87 = arith.constant 0 : index
    %c0_88 = arith.constant 0 : index
    %340 = vector.load %arg8[%c0_87, %c0_88] : memref<1x32xf32, #tpu.memory_space<vmem>>, vector<1x32xf32>
    %341 = vector.broadcast %340 : vector<1x32xf32> to vector<12x32xf32>
    %342 = arith.addf %339, %341 : vector<12x32xf32>
    %c0_89 = arith.constant 0 : index
    %c0_90 = arith.constant 0 : index
    %343 = vector.load %arg12[%c0_89, %c0_90] : memref<12x32xf32, #tpu.memory_space<vmem>>, vector<12x32xf32>
    %344 = arith.addf %342, %343 : vector<12x32xf32>
    %cst_91 = arith.constant dense<0.000000e+00> : vector<12xf32>
    %345 = vector.multi_reduction <add>, %344, %cst_91 [1] : vector<12x32xf32> to vector<12xf32>
    %346 = vector.shape_cast %345 : vector<12xf32> to vector<12x1xf32>
    %cst_92 = arith.constant 3.200000e+01 : f32
    %347 = vector.broadcast %cst_92 : f32 to vector<12x1xf32>
    %348 = arith.divf %346, %347 : vector<12x1xf32>
    %349 = vector.broadcast %348 : vector<12x1xf32> to vector<12x32xf32>
    %350 = arith.subf %344, %349 : vector<12x32xf32>
    %351 = arith.mulf %350, %350 : vector<12x32xf32>
    %cst_93 = arith.constant dense<0.000000e+00> : vector<12xf32>
    %352 = vector.multi_reduction <add>, %351, %cst_93 [1] : vector<12x32xf32> to vector<12xf32>
    %353 = vector.shape_cast %352 : vector<12xf32> to vector<12x1xf32>
    %cst_94 = arith.constant 3.200000e+01 : f32
    %354 = vector.broadcast %cst_94 : f32 to vector<12x1xf32>
    %355 = arith.divf %353, %354 : vector<12x1xf32>
    %356 = vector.broadcast %348 : vector<12x1xf32> to vector<12x32xf32>
    %357 = arith.subf %344, %356 : vector<12x32xf32>
    %cst_95 = arith.constant 9.99999974E-6 : f32
    %358 = vector.broadcast %cst_95 : f32 to vector<12x1xf32>
    %359 = arith.addf %355, %358 : vector<12x1xf32>
    %360 = math.rsqrt %359 : vector<12x1xf32>
    %361 = vector.broadcast %360 : vector<12x1xf32> to vector<12x32xf32>
    %362 = arith.mulf %357, %361 : vector<12x32xf32>
    %c0_96 = arith.constant 0 : index
    %c0_97 = arith.constant 0 : index
    %363 = vector.load %arg9[%c0_96, %c0_97] : memref<1x32xf32, #tpu.memory_space<vmem>>, vector<1x32xf32>
    %364 = vector.broadcast %363 : vector<1x32xf32> to vector<12x32xf32>
    %365 = arith.mulf %362, %364 : vector<12x32xf32>
    %c0_98 = arith.constant 0 : index
    %c0_99 = arith.constant 0 : index
    %366 = vector.load %arg10[%c0_98, %c0_99] : memref<1x32xf32, #tpu.memory_space<vmem>>, vector<1x32xf32>
    %367 = vector.broadcast %366 : vector<1x32xf32> to vector<12x32xf32>
    %368 = arith.addf %365, %367 : vector<12x32xf32>
    %c0_100 = arith.constant 0 : index
    %c0_101 = arith.constant 0 : index
    %369 = vector.load %arg11[%c0_100, %c0_101] : memref<12x32xf32, #tpu.memory_space<vmem>>, vector<12x32xf32>
    tpu.vector_store %arg11[%c0_100, %c0_101], %368 {strides = array<i32>} : memref<12x32xf32, #tpu.memory_space<vmem>>, vector<12x32xf32>,
    return
  }
}

</mosaic_0001>

<bundles_post_ra>
// kernel: tpu_custom_call.1
= control target key start
LH: loop header
LB: loop body
LE: loop exit
PB: predicated region body
PF: predicated region fallthrough
CT: control target
= control target key end

     0   :  { %16 = vsyncpa [#allocation7], 0  ;;  %s1714_s0 = inlined_call_operand.hbm [shape: bf16[12,96], index: 0, kind: input, shape index: {}]   ;;  %s1715_s1 = inlined_call_operand.vmem [shape: bf16[96,32], index: 1, kind: input, shape index: {}]   ;;  %s1716_s2 = inlined_call_operand.vmem [shape: f32[1,32], index: 2, kind: input, shape index: {}]   ;;  %s1717_s3 = inlined_call_operand.vmem [shape: f32[12,32], index: 3, kind: input, shape index: {}]   ;;  %s1718_s4 = inlined_call_operand.vmem [shape: bf16[32,128], index: 4, kind: input, shape index: {}]   ;;  %s1719_s5 = inlined_call_operand.vmem [shape: f32[1,128], index: 5, kind: input, shape index: {}]   ;;  %s1720_s6 = inlined_call_operand.vmem [shape: bf16[32,128], index: 6, kind: input, shape index: {}]   ;;  %s1721_s7 = inlined_call_operand.vmem [shape: bf16[32,32], index: 7, kind: input, shape index: {}]   ;;  %s1722_s8 = inlined_call_operand.vmem [shape: f32[1,32], index: 8, kind: input, shape index: {}]   ;;  %s1723_s9 = inlined_call_operand.vmem [shape: f32[1,32], index: 9, kind: input, shape index: {}]   ;;  %s1724_s10 = inlined_call_operand.vmem [shape: f32[1,32], index: 10, kind: input, shape index: {}]   ;;  %s1725_s11 = inlined_call_operand.hbm [shape: f32[12,32], index: 11, kind: output, shape index: {}]  }
   0x1   :  { %17 = vsyncpa [#allocation8], 0  ;;  %s1408_s17 = smov [#allocation6]  }
   0x2   :  { %s23_s18 = sshll.u32 %s1408_s17, 4  ;;  %s24_s18 = int_to_ptr.vmem [resolvable:$true] %s23_s18 }
   0x3   :  { %s1372_s19 = scalar_lea.vmem %s24_s18, 128  ;;  %p1377_p1 = scmp.lt.s32.totalorder %s24_s18, %s24_s18 }
   0x4   :  { %p1373_p0 = scmp.ne.s32.totalorder %s24_s18, %s1372_s19  ;;  %p1378_p2 = scmp.lt.s32.totalorder %s1372_s19, %s1372_s19 }
   0x6   :  { %p1379_p3 = por %p1378_p2, %p1377_p1 }
   0x8   :  { %p1380_p4 = pnand %p1379_p3, %p1373_p0 }
   0xa   :  { %1383 = shalt.err (!%p1380_p4)
}
   0xb   :  { %s1409_s20 = smov 64   ;;  %s1410_s21 = smov 4  }
   0xc   :  { %29 = dma.hbm_to_vmem [thread:$0]  %s1714_s0, 128, %s24_s18, [#allocation7], %s1409_s20, %s1409_s20, %s1410_s21  }
   0xd   :  { %1404 = dma.done.wait [#allocation7], 128  }
   0xe   :  { %1405 = vsyncadd [#allocation7], 4294967168  ;;  %v1411_v0 = vmov 0.0   ;;  %vm1412_vm0 = vmmov 0   ;;  %v1251_v1 = vld [vmem:[%s1715_s1 + $0x28] sm:$0xff]   ;;  %v1252_v2 = vld [vmem:[%s1715_s1 + $0x20] sm:$0xff]  }
   0xf   :  { %1158 = vmatprep.subr.bf16.mxu0 %v1411_v0  ;;  %1170 = vmatprep.mubr.msk.bf16.mxu0 %vm1412_vm0, %v1411_v0  ;;  %v1253_v3 = vld [vmem:[%s1715_s1 + $0x18] sm:$0xff]   ;;  %v1254_v4 = vld [vmem:[%s1715_s1 + $0x10] sm:$0xff]   ;;  %v1255_v5 = vld [vmem:[%s1715_s1 + $0x8] sm:$0xff]   ;;  %vm116_vm1 = vcmask 785408   ;;  %vm187_vm2 = vcmask 261120   ;;  %vm251_vm3 = vcmask 257024  }
  0x10   :  { %1174 = vmatprep.subr.bf16.mxu1 %v1411_v0  ;;  %1178 = vmatprep.mubr.msk.bf16.mxu1 %vm1412_vm0, %v1411_v0  ;;  %v1256_v6 = vld [vmem:[%s1715_s1] sm:$0xff]   ;;  %v1258_v8 = vld [vmem:[%s1718_s4 + $0x8] sm:$0xff]   ;;  %v1413_v26 = vmov 0   ;;  %vm232_vm4 = vcmask 523264   ;;  %vm234_vm5 = vcmask 519168   ;;  %s1415_s27 = smov 16  }
  0x11   :  { %1159 = vmatpush3.bf16.msra.mxu0 %v1251_v1  ;;  %v1257_v7 = vld [vmem:[#allocation6] sm:$0x3f]   ;;  %1175 = vmatpush3.bf16.msra.mxu1 %v1258_v8  ;;  %v1529_v10 = vld [vmem:[%s1720_s6 + $0x8] sm:$0xff]   ;;  %s1416_s28 = smov 96   ;;  %vm373_vm6 = vcmask 123904   ;;  %s1417_s29 = smov 112  }
  0x12   :  { %1160 = vmatprep.subr.bf16.mxu0 %v1411_v0  ;;  %1176 = vmatprep.subr.bf16.mxu1 %v1411_v0  ;;  %v1259_v9 = vld [vmem:[%s1718_s4] sm:$0xff]   ;;  %v247_v21 = vld [vmem:[%s1717_s3 + $0x8] sm:$0xf]  ;;  %vm380_vm7 = vcmask 255104   ;;  %vm382_vm8 = vcmask 130048   ;;  %s1418_s18 = smov [#allocation9]  }
  0x13   :  { %v1536_v11 = vld [vmem:[%s1720_s6] sm:$0xff]   ;;  %s1077_s1 = sshll.u32 %s1418_s18, 4  ;;  %s1078_s1 = int_to_ptr.vmem [resolvable:$true] %s1077_s1 }
  0x14   :  { %v1089_v12 = vld [vmem:[%s1716_s2] ss:$0 sm:$0xff]  ;;  %s1384_s19 = scalar_lea.vmem %s1078_s1, 256  ;;  %p1389_p6 = scmp.lt.s32.totalorder %s1078_s1, %s1078_s1 }
  0x15   :  { %1161 = vmatpush3.bf16.msra.mxu0 %v1252_v2  ;;  %1177 = vmatpush3.bf16.msra.mxu1 %v1259_v9  ;;  %v246_v15 = vld [vmem:[%s1717_s3] sm:$0xff]  ;;  %p1385_p5 = scmp.ne.s32.totalorder %s1078_s1, %s1384_s19  ;;  %p1390_p7 = scmp.lt.s32.totalorder %s1384_s19, %s1384_s19 }
  0x16   :  { %1162 = vmatprep.subr.bf16.mxu0 %v1411_v0  ;;  %1182 = vmatprep.subr.bf16.mxu1 %v1411_v0  ;;  %v1098_v27 = vld [vmem:[%s1719_s5] ss:$0 sm:$0xff]  ;;  %s1414_s5 = smov 80  }
  0x17   :  { %p1391_p8 = por %p1390_p7, %p1389_p6 }
  0x19   :  { %1163 = vmatpush3.bf16.msra.mxu0 %v1253_v3  ;;  %p1392_p9 = pnand %p1391_p8, %p1385_p5 }
  0x1a   :  { %1164 = vmatprep.subr.bf16.mxu0 %v1411_v0 }
  0x1d   :  { %1165 = vmatpush3.bf16.msra.mxu0 %v1254_v4 }
  0x1e   :  { %1166 = vmatprep.subr.bf16.mxu0 %v1411_v0 }
  0x21   :  { %1167 = vmatpush3.bf16.msra.mxu0 %v1255_v5 }
  0x22   :  { %1168 = vmatprep.subr.bf16.mxu0 %v1411_v0 }
  0x25   :  { %1169 = vmatpush3.bf16.msra.mxu0 %v1256_v6 }
  0x26   :  { %1198 = vmatprep.subr.bf16.mxu0 %v1411_v0 }
  0x28   :  { %1171 = vmatmul.mubr.msk.bf16.vlgmr.msra.gmra.mxu0 %vm116_vm1, %v1257_v7 }
  0x29   :  { %1202 = vmatprep.mubr.msk.bf16.mxu0 %vm1412_vm0, %v1411_v0  ;;  %1199 = vmatpush3.bf16.msra.mxu0 %v1529_v10 }
  0x2a   :  { %1200 = vmatprep.subr.bf16.mxu0 %v1411_v0 }
  0x2d   :  { %1201 = vmatpush3.bf16.msra.mxu0 %v1536_v11 }
  0x2e   :  { %1214 = vmatprep.subr.bf16.mxu0 %v1411_v0 }
  0xe8   :  { %v154_v13 = vpop.f32.mrf.mxu0 }
  0xe9   :  { %v155_v14 = vadd.f32 %v1089_v12, %v154_v13 }
  0xea   :  { %v1172_v16 = vpop.f32.mrf.mxu0 }
  0xeb   :  { %v161_v17 = vmax.f32 %v155_v14, 0.0 }
  0xec   :  { %v157_v18 = vpop.f32.mrf.mxu0 }
  0xed   :  { %v248_v19 = vadd.f32 %v246_v15, %v161_v17  ;;  %v158_v20 = vadd.f32 %v1089_v12, %v157_v18 }
  0xee   :  { %v1173_v22 = vpop.f32.mrf.mxu0 }
  0xef   :  { %250 = vst.msk [vmem:[#allocation2] sm:$0xff] %vm187_vm2, %v248_v19  ;;  %v162_v23 = vmax.f32 %v158_v20, 0.0 }
  0xf1   :  { %v163_v24 = vpack.c.bf16 %v162_v23, %v161_v17  ;;  %v249_v25 = vadd.f32 %v247_v21, %v162_v23 }
  0xf3   :  { %1179 = vmatmul.mubr.msk.bf16.vlgmr.msra.gmra.mxu1 %vm187_vm2, %v163_v24  ;;  %252 = vst.msk [vmem:[#allocation2 + $0x8] sm:$0xf] %vm251_vm3, %v249_v25 }
  0xf4   :  { %1183 = vmatpush3.bf16.msra.mxu1 %v1529_v10  ;;  %1186 = vmatprep.mubr.msk.bf16.mxu1 %vm1412_vm0, %v1411_v0 }
  0xf5   :  { %1184 = vmatprep.subr.bf16.mxu1 %v1411_v0 }
  0xf8   :  { %1185 = vmatpush3.bf16.msra.mxu1 %v1536_v11 }
  0xf9   :  { %1190 = vmatprep.subr.bf16.mxu1 %v1411_v0 }
  0xfb   :  { %1187 = vmatmul.mubr.bf16.vlgmr.msra.gmra.mxu1 %v1413_v26 }
  0xfc   :  { %1191 = vmatpush3.bf16.msra.mxu1 %v1529_v10  ;;  %1194 = vmatprep.mubr.msk.bf16.mxu1 %vm1412_vm0, %v1411_v0 }
  0xfd   :  { %1192 = vmatprep.subr.bf16.mxu1 %v1411_v0 }
 0x100   :  { %1193 = vmatpush3.bf16.msra.mxu1 %v1536_v11 }
 0x101   :  { %1206 = vmatprep.subr.bf16.mxu1 %v1411_v0 }
 0x1b3   :  { %v225_v28 = vpop.f32.mrf.mxu1 }
 0x1b4   :  { %v1567_v29 = vadd.f32 %v1098_v27, %v225_v28 }
 0x1b5   :  { %v1180_v30 = vpop.f32.mrf.mxu1 }
 0x1b6   :  { %233 = vst.msk [vmem:[#allocation3] sm:$0xff] %vm232_vm4, %v1567_v29 }
 0x1b7   :  { %v228_v31 = vpop.f32.mrf.mxu1 }
 0x1b8   :  { %v229_v32 = vadd.f32 %v1098_v27, %v228_v31 }
 0x1b9   :  { %v1181_v33 = vpop.f32.mrf.mxu1 }
 0x1ba   :  { %240 = vrot.lane.b32.xlu0 %v229_v32, %s1409_s20  ;;  %235 = vst.msk [vmem:[#allocation3 + $0x8] sm:$0xf] %vm234_vm5, %v229_v32 }
 0x1bb   :  { %v306_v34 = vpop.f32.mrf.mxu1 }
 0x1bd   :  { %v312_v35 = vld [vmem:[#allocation3] sm:$0x3]  ;;  %v1188_v36 = vpop.f32.mrf.mxu1  ;;  %v429_v14 = vld [vmem:[#allocation3 + $0x2] sm:$0x3] }
 0x1be   :  { %v313_v37 = vadd.f32 %v312_v35, %v306_v34  ;;  %317 = vrot.lane.b32.xlu0 %v306_v34, %s1409_s20 }
 0x1bf   :  { %v309_v38 = vpop.f32.mrf.mxu1 }
 0x1c0   :  { %1264 = vtanh.f32 %v313_v37  ;;  %v1104_v41 = vmul.f32 -1.442695, %v313_v37 }
 0x1c1   :  { %v1189_v39 = vpop.f32.mrf.mxu1 }
 0x1c2   :  { %1266 = vpow2.f32 %v1104_v41 }
 0x1cd   :  { %v1265_v40 = vpop.eup %1264 }
 0x1ce   :  { %337 = vrot.lane.b32.xlu1 %v1265_v40, %s1414_s5 }
 0x1cf   :  { %v1267_v42 = vpop.eup %1266 }
 0x1d0   :  { %v324_v44 = vadd.f32 1.0, %v1267_v42 }
 0x1d2   :  { %1268 = vrcp.f32 %v324_v44 }
 0x1df   :  { %v1269_v48 = vpop.eup %1268 }
 0x1e0   :  { %v335_v55 = vmul.f32 0.0, %v1269_v48 }
 0x22c   :  { %v241_v43 = vpop.permute.xlu0 %240 }
 0x22d   :  { %245 = vst.msk [vmem:[#allocation4 + $0x8] sm:$0xf] %vm234_vm5, %v241_v43 }
 0x230   :  { %v318_v45 = vpop.permute.xlu0 %317 }
 0x234   :  { %v315_v46 = vld [vmem:[#allocation4 + $0xa] sm:$0x3]  ;;  %v432_v23 = vld [vmem:[#allocation4 + $0x8] sm:$0x3] }
 0x235   :  { %v320_v47 = vadd.f32 %v318_v45, %v315_v46 }
 0x237   :  { %1270 = vtanh.f32 %v320_v47  ;;  %v1105_v52 = vmul.f32 -1.442695, %v320_v47 }
 0x239   :  { %1272 = vpow2.f32 %v1105_v52 }
 0x240   :  { %v338_v49 = vpop.permute.xlu1 %337 }
 0x241   :  { %v340_v50 = vmul.f32 %v1269_v48, %v338_v49 }
 0x243   :  { %342 = vrot.lane.b32.xlu0 %v340_v50, %s1415_s27 }
 0x244   :  { %v1271_v51 = vpop.eup %1270 }
 0x245   :  { %348 = vrot.lane.b32.xlu1 %v1271_v51, %s1414_s5 }
 0x246   :  { %v1273_v53 = vpop.eup %1272 }
 0x247   :  { %v330_v54 = vadd.f32 1.0, %v1273_v53 }
 0x249   :  { %1274 = vrcp.f32 %v330_v54  ;;  %v544_v54 = vld [vmem:[#allocation3 + $0x4] sm:$0x3] }
 0x256   :  { %v1275_v58 = vpop.eup %1274 }
 0x257   :  { %v346_v62 = vmul.f32 0.0, %v1275_v58 }
 0x2b5   :  { %v343_v56 = vpop.permute.xlu0 %342 }
 0x2b6   :  { %v1578_v57 = vadd.f32 %v343_v56, %v335_v55 }
 0x2b7   :  { %v349_v59 = vpop.permute.xlu1 %348 }
 0x2b8   :  { %1276 = vtanh.f32 %v1578_v57  ;;  %v351_v60 = vmul.f32 %v1275_v58, %v349_v59 }
 0x2ba   :  { %353 = vrot.lane.b32.xlu1 %v351_v60, %s1415_s27 }
 0x2c5   :  { %v1277_v61 = vpop.eup %1276 }
 0x2c6   :  { %359 = vrot.lane.b32.xlu0 %v1277_v61, %s1415_s27 }
 0x32c   :  { %v354_v63 = vpop.permute.xlu1 %353 }
 0x32d   :  { %v1583_v1 = vadd.f32 %v354_v63, %v346_v62 }
 0x32f   :  { %1278 = vtanh.f32 %v1583_v1 }
 0x338   :  { %v360_v2 = vpop.permute.xlu0 %359 }
 0x339   :  { %v362_v3 = vmul.f32 %v1269_v48, %v360_v2 }
 0x33b   :  { %370 = vrot.lane.b32.xlu0 %v362_v3, %s1416_s28 }
 0x33c   :  { %v1279_v4 = vpop.eup %1278 }
 0x33d   :  { %365 = vrot.lane.b32.xlu1 %v1279_v4, %s1415_s27 }
 0x3ad   :  { %v371_v5 = vpop.permute.xlu0 %370 }
 0x3ae   :  { %374 = vst.msk [vmem:[#allocation5] sm:$0x3] %vm373_vm6, %v371_v5 }
 0x3af   :  { %v366_v6 = vpop.permute.xlu1 %365 }
 0x3b0   :  { %v368_v7 = vmul.f32 %v1275_v58, %v366_v6 }
 0x3b2   :  { %376 = vrot.lane.b32.xlu1 %v368_v7, %s1417_s29 }
 0x424   :  { %v377_v8 = vpop.permute.xlu1 %376 }
 0x425   :  { %381 = vst.msk [vmem:[#allocation5 + $0xa] sm:$0x3] %vm380_vm7, %v377_v8  ;;  %v383_v9 = vsel %vm382_vm8, %v371_v5, %v377_v8 }
 0x426   :  { %v384_v12 = vpack.c.bf16 %v383_v9, %v383_v9 }
 0x428   :  { %1195 = vmatmul.mubr.msk.bf16.vlgmr.msra.gmra.mxu1 %vm187_vm2, %v384_v12 }
 0x429   :  { %1207 = vmatpush3.bf16.msra.mxu1 %v1529_v10  ;;  %1210 = vmatprep.mubr.msk.bf16.mxu1 %vm1412_vm0, %v1411_v0 }
 0x42a   :  { %1208 = vmatprep.subr.bf16.mxu1 %v1411_v0 }
 0x42d   :  { %1209 = vmatpush3.bf16.msra.mxu1 %v1536_v11 }
 0x42e   :  { %1222 = vmatprep.subr.bf16.mxu1 %v1411_v0 }
 0x4e8   :  { %v422_v13 = vpop.f32.mrf.mxu1 }
 0x4e9   :  { %v430_v15 = vadd.f32 %v429_v14, %v422_v13  ;;  %434 = vrot.lane.b32.xlu0 %v422_v13, %s1409_s20 }
 0x4ea   :  { %v1196_v16 = vpop.f32.mrf.mxu1 }
 0x4eb   :  { %1280 = vtanh.f32 %v430_v15  ;;  %v1107_v20 = vmul.f32 -1.442695, %v430_v15 }
 0x4ec   :  { %v425_v17 = vpop.f32.mrf.mxu1 }
 0x4ed   :  { %1282 = vpow2.f32 %v1107_v20 }
 0x4ee   :  { %v1197_v18 = vpop.f32.mrf.mxu1 }
 0x4f8   :  { %v1281_v19 = vpop.eup %1280 }
 0x4f9   :  { %454 = vrot.lane.b32.xlu1 %v1281_v19, %s1414_s5 }
 0x4fa   :  { %v1283_v21 = vpop.eup %1282 }
 0x4fb   :  { %v441_v22 = vadd.f32 1.0, %v1283_v21 }
 0x4fd   :  { %1284 = vrcp.f32 %v441_v22 }
 0x50a   :  { %v1285_v26 = vpop.eup %1284 }
 0x50b   :  { %v452_v37 = vmul.f32 %v1285_v26, %v1578_v57 }
 0x55b   :  { %v435_v24 = vpop.permute.xlu0 %434 }
 0x55c   :  { %v437_v25 = vadd.f32 %v435_v24, %v432_v23 }
 0x55e   :  { %1286 = vtanh.f32 %v437_v25  ;;  %v1108_v31 = vmul.f32 -1.442695, %v437_v25 }
 0x560   :  { %1288 = vpow2.f32 %v1108_v31 }
 0x56b   :  { %v1287_v27 = vpop.eup %1286  ;;  %v455_v28 = vpop.permute.xlu1 %454 }
 0x56c   :  { %v457_v30 = vmul.f32 %v1285_v26, %v455_v28  ;;  %465 = vrot.lane.b32.xlu0 %v1287_v27, %s1414_s5 }
 0x56d   :  { %v1289_v32 = vpop.eup %1288 }
 0x56e   :  { %459 = vrot.lane.b32.xlu1 %v457_v30, %s1415_s27  ;;  %v447_v33 = vadd.f32 1.0, %v1289_v32 }
 0x570   :  { %1290 = vrcp.f32 %v447_v33  ;;  %v659_v33 = vld [vmem:[#allocation3 + $0x6] sm:$0x3] }
 0x57d   :  { %v1291_v34 = vpop.eup %1290 }
 0x57e   :  { %v463_v41 = vmul.f32 %v1291_v34, %v1583_v1 }
 0x5de   :  { %v466_v35 = vpop.permute.xlu0 %465 }
 0x5df   :  { %v468_v36 = vmul.f32 %v1291_v34, %v466_v35 }
 0x5e0   :  { %v460_v38 = vpop.permute.xlu1 %459 }
 0x5e1   :  { %v1604_v39 = vadd.f32 %v460_v38, %v452_v37  ;;  %470 = vrot.lane.b32.xlu0 %v468_v36, %s1415_s27 }
 0x5e3   :  { %1292 = vtanh.f32 %v1604_v39 }
 0x5f0   :  { %v1293_v40 = vpop.eup %1292 }
 0x5f1   :  { %476 = vrot.lane.b32.xlu1 %v1293_v40, %s1415_s27 }
 0x653   :  { %v471_v42 = vpop.permute.xlu0 %470 }
 0x654   :  { %v1610_v43 = vadd.f32 %v471_v42, %v463_v41 }
 0x656   :  { %1294 = vtanh.f32 %v1610_v43 }
 0x663   :  { %v1295_v44 = vpop.eup %1294  ;;  %v477_v45 = vpop.permute.xlu1 %476 }
 0x664   :  { %v479_v46 = vmul.f32 %v1285_v26, %v477_v45  ;;  %482 = vrot.lane.b32.xlu0 %v1295_v44, %s1415_s27 }
 0x666   :  { %487 = vrot.lane.b32.xlu1 %v479_v46, %s1416_s28 }
 0x66a   :  { %238 = vrot.lane.b32.xlu1 %v1567_v29, %s1409_s20 }
 0x6d6   :  { %v483_v47 = vpop.permute.xlu0 %482 }
 0x6d7   :  { %v485_v48 = vmul.f32 %v1291_v34, %v483_v47 }
 0x6d8   :  { %v488_v49 = vpop.permute.xlu1 %487 }
 0x6d9   :  { %491 = vst.msk [vmem:[#allocation5 + $0x2] sm:$0x3] %vm373_vm6, %v488_v49  ;;  %493 = vrot.lane.b32.xlu0 %v485_v48, %s1417_s29 }
 0x6dc   :  { %v239_v50 = vpop.permute.xlu1 %238 }
 0x6dd   :  { %244 = vst.msk [vmem:[#allocation4] sm:$0xff] %vm232_vm4, %v239_v50 }
 0x6e4   :  { %v547_v63 = vld [vmem:[#allocation4 + $0x6] sm:$0x3]  ;;  %v662_v41 = vld [vmem:[#allocation4 + $0x4] sm:$0x3] }
 0x74b   :  { %v494_v51 = vpop.permute.xlu0 %493 }
 0x74c   :  { %497 = vst.msk [vmem:[#allocation5 + $0x8] sm:$0x3] %vm380_vm7, %v494_v51  ;;  %v498_v52 = vsel %vm382_vm8, %v488_v49, %v494_v51 }
 0x74d   :  { %v499_v53 = vpack.c.bf16 %v498_v52, %v498_v52 }
 0x74f   :  { %1203 = vmatmul.mubr.msk.bf16.vlgmr.msra.gmra.mxu0 %vm187_vm2, %v499_v53 }
 0x750   :  { %1215 = vmatpush3.bf16.msra.mxu0 %v1529_v10  ;;  %1218 = vmatprep.mubr.msk.bf16.mxu0 %vm1412_vm0, %v1411_v0 }
 0x751   :  { %1216 = vmatprep.subr.bf16.mxu0 %v1411_v0 }
 0x754   :  { %1217 = vmatpush3.bf16.msra.mxu0 %v1536_v11 }
 0x755   :  { %1230 = vmatprep.subr.bf16.mxu0 %v1411_v0 }
 0x80f   :  { %v537_v29 = vpop.f32.mrf.mxu0 }
 0x810   :  { %v545_v55 = vadd.f32 %v544_v54, %v537_v29  ;;  %549 = vrot.lane.b32.xlu0 %v537_v29, %s1409_s20 }
 0x811   :  { %v1204_v56 = vpop.f32.mrf.mxu0 }
 0x812   :  { %1296 = vtanh.f32 %v545_v55  ;;  %v1110_v60 = vmul.f32 -1.442695, %v545_v55 }
 0x813   :  { %v540_v57 = vpop.f32.mrf.mxu0 }
 0x814   :  { %1298 = vpow2.f32 %v1110_v60 }
 0x815   :  { %v1205_v58 = vpop.f32.mrf.mxu0 }
 0x81f   :  { %v1297_v59 = vpop.eup %1296 }
 0x820   :  { %569 = vrot.lane.b32.xlu1 %v1297_v59, %s1414_s5 }
 0x821   :  { %v1299_v61 = vpop.eup %1298 }
 0x822   :  { %v556_v62 = vadd.f32 1.0, %v1299_v61 }
 0x824   :  { %1300 = vrcp.f32 %v556_v62 }
 0x831   :  { %v1301_v3 = vpop.eup %1300 }
 0x832   :  { %v567_v15 = vmul.f32 %v1301_v3, %v1604_v39 }
 0x882   :  { %v550_v1 = vpop.permute.xlu0 %549 }
 0x883   :  { %v552_v2 = vadd.f32 %v550_v1, %v547_v63 }
 0x885   :  { %1302 = vtanh.f32 %v552_v2  ;;  %v1111_v7 = vmul.f32 -1.442695, %v552_v2 }
 0x887   :  { %1304 = vpow2.f32 %v1111_v7 }
 0x892   :  { %v1303_v4 = vpop.eup %1302  ;;  %v570_v5 = vpop.permute.xlu1 %569 }
 0x893   :  { %v572_v6 = vmul.f32 %v1301_v3, %v570_v5  ;;  %580 = vrot.lane.b32.xlu0 %v1303_v4, %s1414_s5 }
 0x894   :  { %v1305_v8 = vpop.eup %1304 }
 0x895   :  { %574 = vrot.lane.b32.xlu1 %v572_v6, %s1415_s27  ;;  %v562_v9 = vadd.f32 1.0, %v1305_v8  ;;  %v772_v6 = vld [vmem:[#allocation3 + $0x8] sm:$0x3] }
 0x897   :  { %1306 = vrcp.f32 %v562_v9 }
 0x8a4   :  { %v1307_v12 = vpop.eup %1306 }
 0x8a5   :  { %v578_v19 = vmul.f32 %v1307_v12, %v1610_v43 }
 0x905   :  { %v581_v13 = vpop.permute.xlu0 %580 }
 0x906   :  { %v583_v14 = vmul.f32 %v1307_v12, %v581_v13 }
 0x907   :  { %v575_v16 = vpop.permute.xlu1 %574 }
 0x908   :  { %v577_v17 = vadd.f32 %v575_v16, %v567_v15  ;;  %585 = vrot.lane.b32.xlu0 %v583_v14, %s1415_s27 }
 0x90a   :  { %1308 = vtanh.f32 %v577_v17 }
 0x917   :  { %v1309_v18 = vpop.eup %1308 }
 0x918   :  { %591 = vrot.lane.b32.xlu1 %v1309_v18, %s1415_s27 }
 0x97a   :  { %v586_v20 = vpop.permute.xlu0 %585 }
 0x97b   :  { %v588_v21 = vadd.f32 %v586_v20, %v578_v19 }
 0x97d   :  { %1310 = vtanh.f32 %v588_v21 }
 0x98a   :  { %v1311_v22 = vpop.eup %1310  ;;  %v592_v23 = vpop.permute.xlu1 %591 }
 0x98b   :  { %v594_v24 = vmul.f32 %v1301_v3, %v592_v23  ;;  %597 = vrot.lane.b32.xlu0 %v1311_v22, %s1415_s27 }
 0x98d   :  { %602 = vrot.lane.b32.xlu1 %v594_v24, %s1416_s28 }
 0x9fd   :  { %v598_v25 = vpop.permute.xlu0 %597 }
 0x9fe   :  { %v600_v26 = vmul.f32 %v1307_v12, %v598_v25 }
 0x9ff   :  { %v603_v27 = vpop.permute.xlu1 %602 }
 0xa00   :  { %606 = vst.msk [vmem:[#allocation5 + $0x4] sm:$0x3] %vm373_vm6, %v603_v27  ;;  %608 = vrot.lane.b32.xlu0 %v600_v26, %s1417_s29 }
 0xa72   :  { %v609_v28 = vpop.permute.xlu0 %608 }
 0xa73   :  { %612 = vst.msk [vmem:[#allocation5 + $0x6] sm:$0x3] %vm380_vm7, %v609_v28  ;;  %v613_v30 = vsel %vm382_vm8, %v603_v27, %v609_v28 }
 0xa74   :  { %v614_v31 = vpack.c.bf16 %v613_v30, %v613_v30 }
 0xa76   :  { %1211 = vmatmul.mubr.msk.bf16.vlgmr.msra.gmra.mxu1 %vm187_vm2, %v614_v31 }
 0xa77   :  { %1223 = vmatpush3.bf16.msra.mxu1 %v1529_v10  ;;  %1226 = vmatprep.mubr.msk.bf16.mxu1 %vm1412_vm0, %v1411_v0 }
 0xa78   :  { %1224 = vmatprep.subr.bf16.mxu1 %v1411_v0 }
 0xa7b   :  { %1225 = vmatpush3.bf16.msra.mxu1 %v1536_v11 }
 0xb36   :  { %v652_v32 = vpop.f32.mrf.mxu1 }
 0xb37   :  { %v660_v34 = vadd.f32 %v659_v33, %v652_v32  ;;  %664 = vrot.lane.b32.xlu1 %v652_v32, %s1409_s20 }
 0xb38   :  { %v1212_v35 = vpop.f32.mrf.mxu1 }
 0xb39   :  { %1312 = vtanh.f32 %v660_v34  ;;  %v1113_v10 = vmul.f32 -1.442695, %v660_v34 }
 0xb3a   :  { %v655_v36 = vpop.f32.mrf.mxu1 }
 0xb3b   :  { %1314 = vpow2.f32 %v1113_v10 }
 0xb3c   :  { %v1213_v37 = vpop.f32.mrf.mxu1 }
 0xb46   :  { %v1313_v38 = vpop.eup %1312 }
 0xb47   :  { %684 = vrot.lane.b32.xlu0 %v1313_v38, %s1414_s5 }
 0xb48   :  { %v1315_v39 = vpop.eup %1314 }
 0xb49   :  { %v671_v40 = vadd.f32 1.0, %v1315_v39 }
 0xb4b   :  { %1316 = vrcp.f32 %v671_v40 }
 0xb58   :  { %v1317_v11 = vpop.eup %1316 }
 0xb59   :  { %v682_v53 = vmul.f32 %v1317_v11, %v577_v17  ;;  %v775_v17 = vld [vmem:[#allocation4 + $0x2] sm:$0x3] }
 0xba9   :  { %v665_v42 = vpop.permute.xlu1 %664 }
 0xbaa   :  { %v667_v43 = vadd.f32 %v665_v42, %v662_v41 }
 0xbac   :  { %1318 = vtanh.f32 %v667_v43  ;;  %v1114_v47 = vmul.f32 -1.442695, %v667_v43 }
 0xbae   :  { %1320 = vpow2.f32 %v1114_v47 }
 0xbb9   :  { %v1319_v44 = vpop.eup %1318  ;;  %v685_v45 = vpop.permute.xlu0 %684 }
 0xbba   :  { %v687_v46 = vmul.f32 %v1317_v11, %v685_v45  ;;  %695 = vrot.lane.b32.xlu1 %v1319_v44, %s1414_s5 }
 0xbbb   :  { %v1321_v48 = vpop.eup %1320 }
 0xbbc   :  { %689 = vrot.lane.b32.xlu0 %v687_v46, %s1415_s27  ;;  %v677_v49 = vadd.f32 1.0, %v1321_v48  ;;  %v885_v46 = vld [vmem:[#allocation3 + $0xa] sm:$0x3] }
 0xbbe   :  { %1322 = vrcp.f32 %v677_v49 }
 0xbcb   :  { %v1323_v50 = vpop.eup %1322 }
 0xbcc   :  { %v693_v56 = vmul.f32 %v1323_v50, %v588_v21 }
 0xc2c   :  { %v696_v51 = vpop.permute.xlu1 %695 }
 0xc2d   :  { %v698_v52 = vmul.f32 %v1323_v50, %v696_v51 }
 0xc2e   :  { %v690_v29 = vpop.permute.xlu0 %689 }
 0xc2f   :  { %v692_v54 = vadd.f32 %v690_v29, %v682_v53  ;;  %700 = vrot.lane.b32.xlu1 %v698_v52, %s1415_s27 }
 0xc31   :  { %1324 = vtanh.f32 %v692_v54 }
 0xc3e   :  { %v1325_v55 = vpop.eup %1324 }
 0xc3f   :  { %706 = vrot.lane.b32.xlu0 %v1325_v55, %s1415_s27 }
 0xca1   :  { %v701_v57 = vpop.permute.xlu1 %700 }
 0xca2   :  { %v703_v58 = vadd.f32 %v701_v57, %v693_v56 }
 0xca4   :  { %1326 = vtanh.f32 %v703_v58 }
 0xcb1   :  { %v1327_v59 = vpop.eup %1326  ;;  %v707_v60 = vpop.permute.xlu0 %706 }
 0xcb2   :  { %v709_v61 = vmul.f32 %v1317_v11, %v707_v60  ;;  %712 = vrot.lane.b32.xlu1 %v1327_v59, %s1415_s27 }
 0xcb4   :  { %717 = vrot.lane.b32.xlu0 %v709_v61, %s1416_s28 }
 0xd24   :  { %v713_v62 = vpop.permute.xlu1 %712 }
 0xd25   :  { %v715_v63 = vmul.f32 %v1323_v50, %v713_v62 }
 0xd26   :  { %v718_v1 = vpop.permute.xlu0 %717 }
 0xd27   :  { %720 = vst.msk [vmem:[#allocation5 + $0x6] sm:$0x3] %vm373_vm6, %v718_v1  ;;  %722 = vrot.lane.b32.xlu1 %v715_v63, %s1417_s29 }
 0xd99   :  { %v723_v2 = vpop.permute.xlu1 %722 }
 0xd9a   :  { %725 = vst.msk [vmem:[#allocation5 + $0x4] sm:$0x3] %vm380_vm7, %v723_v2  ;;  %v726_v3 = vsel %vm382_vm8, %v718_v1, %v723_v2 }
 0xd9b   :  { %v727_v4 = vpack.c.bf16 %v726_v3, %v726_v3 }
 0xd9d   :  { %1219 = vmatmul.mubr.msk.bf16.vlgmr.msra.gmra.mxu0 %vm187_vm2, %v727_v4 }
 0xd9e   :  { %1234 = vmatprep.mubr.msk.bf16.mxu0 %vm1412_vm0, %v1411_v0 }
 0xe5d   :  { %v765_v5 = vpop.f32.mrf.mxu0 }
 0xe5e   :  { %v773_v7 = vadd.f32 %v772_v6, %v765_v5  ;;  %777 = vrot.lane.b32.xlu0 %v765_v5, %s1409_s20 }
 0xe5f   :  { %v1220_v8 = vpop.f32.mrf.mxu0 }
 0xe60   :  { %1328 = vtanh.f32 %v773_v7  ;;  %v1116_v14 = vmul.f32 -1.442695, %v773_v7 }
 0xe61   :  { %v768_v9 = vpop.f32.mrf.mxu0 }
 0xe62   :  { %1330 = vpow2.f32 %v1116_v14 }
 0xe63   :  { %v1221_v12 = vpop.f32.mrf.mxu0 }
 0xe6d   :  { %v1329_v13 = vpop.eup %1328 }
 0xe6e   :  { %797 = vrot.lane.b32.xlu1 %v1329_v13, %s1414_s5 }
 0xe6f   :  { %v1331_v15 = vpop.eup %1330 }
 0xe70   :  { %v784_v16 = vadd.f32 1.0, %v1331_v15 }
 0xe72   :  { %1332 = vrcp.f32 %v784_v16  ;;  %v1262_v16 = vld [vmem:[%s1721_s7 + $0x8] sm:$0xff]  }
 0xe73   :  { %1231 = vmatpush3.bf16.msra.mxu0 %v1262_v16 }
 0xe74   :  { %1232 = vmatprep.subr.bf16.mxu0 %v1411_v0  ;;  %v1121_v0 = vld [vmem:[%s1722_s8] ss:$0 sm:$0xff] }
 0xe7f   :  { %v1333_v20 = vpop.eup %1332 }
 0xe80   :  { %v795_v31 = vmul.f32 %v1333_v20, %v692_v54  ;;  %v887_v54 = vld [vmem:[#allocation4] sm:$0x3] }
 0xed0   :  { %v778_v18 = vpop.permute.xlu0 %777 }
 0xed1   :  { %v780_v19 = vadd.f32 %v778_v18, %v775_v17  ;;  %v1263_v17 = vld [vmem:[%s1721_s7] sm:$0xff]  }
 0xed2   :  { %1233 = vmatpush3.bf16.msra.mxu0 %v1263_v17 }
 0xed3   :  { %1334 = vtanh.f32 %v780_v19  ;;  %v1117_v24 = vmul.f32 -1.442695, %v780_v19 }
 0xed5   :  { %1336 = vpow2.f32 %v1117_v24 }
 0xee0   :  { %v1335_v21 = vpop.eup %1334  ;;  %v798_v22 = vpop.permute.xlu1 %797 }
 0xee1   :  { %v800_v23 = vmul.f32 %v1333_v20, %v798_v22  ;;  %808 = vrot.lane.b32.xlu0 %v1335_v21, %s1414_s5 }
 0xee2   :  { %v1337_v25 = vpop.eup %1336 }
 0xee3   :  { %802 = vrot.lane.b32.xlu1 %v800_v23, %s1415_s27  ;;  %v790_v26 = vadd.f32 1.0, %v1337_v25 }
 0xee5   :  { %1338 = vrcp.f32 %v790_v26 }
 0xef2   :  { %v1339_v27 = vpop.eup %1338 }
 0xef3   :  { %v806_v35 = vmul.f32 %v1339_v27, %v703_v58 }
 0xf53   :  { %v809_v28 = vpop.permute.xlu0 %808 }
 0xf54   :  { %v811_v30 = vmul.f32 %v1339_v27, %v809_v28  ;;  %v1021_v28 = vld [vmem:[#allocation2] sm:$0xff] }
 0xf55   :  { %v803_v32 = vpop.permute.xlu1 %802 }
 0xf56   :  { %v805_v33 = vadd.f32 %v803_v32, %v795_v31  ;;  %813 = vrot.lane.b32.xlu0 %v811_v30, %s1415_s27 }
 0xf58   :  { %1340 = vtanh.f32 %v805_v33 }
 0xf65   :  { %v1341_v34 = vpop.eup %1340 }
 0xf66   :  { %819 = vrot.lane.b32.xlu1 %v1341_v34, %s1415_s27 }
 0xfc8   :  { %v814_v36 = vpop.permute.xlu0 %813 }
 0xfc9   :  { %v816_v37 = vadd.f32 %v814_v36, %v806_v35  ;;  %v1022_v35 = vld [vmem:[#allocation2 + $0x8] sm:$0xf] }
 0xfcb   :  { %1342 = vtanh.f32 %v816_v37 }
 0xfd8   :  { %v1343_v38 = vpop.eup %1342  ;;  %v820_v10 = vpop.permute.xlu1 %819 }
 0xfd9   :  { %v822_v39 = vmul.f32 %v1333_v20, %v820_v10  ;;  %825 = vrot.lane.b32.xlu0 %v1343_v38, %s1415_s27 }
 0xfdb   :  { %830 = vrot.lane.b32.xlu1 %v822_v39, %s1416_s28 }
0x104b   :  { %v826_v40 = vpop.permute.xlu0 %825 }
0x104c   :  { %v828_v41 = vmul.f32 %v1339_v27, %v826_v40 }
0x104d   :  { %v831_v42 = vpop.permute.xlu1 %830 }
0x104e   :  { %833 = vst.msk [vmem:[#allocation5 + $0x8] sm:$0x3] %vm373_vm6, %v831_v42  ;;  %835 = vrot.lane.b32.xlu0 %v828_v41, %s1417_s29 }
0x10c0   :  { %v836_v43 = vpop.permute.xlu0 %835 }
0x10c1   :  { %838 = vst.msk [vmem:[#allocation5 + $0x2] sm:$0x3] %vm380_vm7, %v836_v43  ;;  %v839_v11 = vsel %vm382_vm8, %v831_v42, %v836_v43 }
0x10c2   :  { %v840_v44 = vpack.c.bf16 %v839_v11, %v839_v11 }
0x10c4   :  { %1227 = vmatmul.mubr.msk.bf16.vlgmr.msra.gmra.mxu1 %vm187_vm2, %v840_v44 }
0x1184   :  { %v878_v45 = vpop.f32.mrf.mxu1 }
0x1185   :  { %v886_v47 = vadd.f32 %v885_v46, %v878_v45  ;;  %889 = vrot.lane.b32.xlu1 %v878_v45, %s1409_s20 }
0x1186   :  { %v1228_v48 = vpop.f32.mrf.mxu1 }
0x1187   :  { %1344 = vtanh.f32 %v886_v47  ;;  %v1119_v52 = vmul.f32 -1.442695, %v886_v47 }
0x1188   :  { %v881_v49 = vpop.f32.mrf.mxu1 }
0x1189   :  { %1346 = vpow2.f32 %v1119_v52 }
0x118a   :  { %v1229_v50 = vpop.f32.mrf.mxu1 }
0x1194   :  { %v1345_v51 = vpop.eup %1344 }
0x1195   :  { %909 = vrot.lane.b32.xlu0 %v1345_v51, %s1414_s5 }
0x1196   :  { %v1347_v53 = vpop.eup %1346 }
0x1197   :  { %v896_v29 = vadd.f32 1.0, %v1347_v53  ;;  %v1125_v53 = vld [vmem:[%s1723_s9] ss:$0 sm:$0xff] }
0x1199   :  { %1348 = vrcp.f32 %v896_v29 }
0x11a6   :  { %v1349_v57 = vpop.eup %1348 }
0x11a7   :  { %v907_v4 = vmul.f32 %v1349_v57, %v805_v33 }
0x11f7   :  { %v890_v55 = vpop.permute.xlu1 %889 }
0x11f8   :  { %v892_v56 = vadd.f32 %v890_v55, %v887_v54  ;;  %v1126_v54 = vld [vmem:[%s1724_s10] ss:$0 sm:$0xff] }
0x11fa   :  { %1350 = vtanh.f32 %v892_v56  ;;  %v1120_v61 = vmul.f32 -1.442695, %v892_v56 }
0x11fc   :  { %1352 = vpow2.f32 %v1120_v61 }
0x1207   :  { %v1351_v58 = vpop.eup %1350  ;;  %v910_v59 = vpop.permute.xlu0 %909 }
0x1208   :  { %v912_v60 = vmul.f32 %v1349_v57, %v910_v59  ;;  %920 = vrot.lane.b32.xlu1 %v1351_v58, %s1414_s5 }
0x1209   :  { %v1353_v62 = vpop.eup %1352 }
0x120a   :  { %914 = vrot.lane.b32.xlu0 %v912_v60, %s1415_s27  ;;  %v902_v63 = vadd.f32 1.0, %v1353_v62 }
0x120c   :  { %1354 = vrcp.f32 %v902_v63 }
0x1219   :  { %v1355_v1 = vpop.eup %1354 }
0x121a   :  { %v918_v8 = vmul.f32 %v1355_v1, %v816_v37 }
0x127a   :  { %v921_v2 = vpop.permute.xlu1 %920 }
0x127b   :  { %v923_v3 = vmul.f32 %v1355_v1, %v921_v2 }
0x127c   :  { %v915_v5 = vpop.permute.xlu0 %914 }
0x127d   :  { %v917_v6 = vadd.f32 %v915_v5, %v907_v4  ;;  %925 = vrot.lane.b32.xlu1 %v923_v3, %s1415_s27 }
0x127f   :  { %1356 = vtanh.f32 %v917_v6 }
0x128c   :  { %v1357_v7 = vpop.eup %1356 }
0x128d   :  { %931 = vrot.lane.b32.xlu0 %v1357_v7, %s1415_s27 }
0x12ef   :  { %v926_v9 = vpop.permute.xlu1 %925 }
0x12f0   :  { %v928_v12 = vadd.f32 %v926_v9, %v918_v8 }
0x12f2   :  { %1358 = vtanh.f32 %v928_v12 }
0x12ff   :  { %v1359_v13 = vpop.eup %1358  ;;  %v932_v14 = vpop.permute.xlu0 %931 }
0x1300   :  { %v934_v15 = vmul.f32 %v1349_v57, %v932_v14  ;;  %937 = vrot.lane.b32.xlu1 %v1359_v13, %s1415_s27 }
0x1302   :  { %942 = vrot.lane.b32.xlu0 %v934_v15, %s1416_s28 }
0x1372   :  { %v938_v18 = vpop.permute.xlu1 %937 }
0x1373   :  { %v940_v19 = vmul.f32 %v1355_v1, %v938_v18 }
0x1374   :  { %v943_v20 = vpop.permute.xlu0 %942 }
0x1375   :  { %945 = vst.msk [vmem:[#allocation5 + $0xa] sm:$0x3] %vm373_vm6, %v943_v20  ;;  %947 = vrot.lane.b32.xlu1 %v940_v19, %s1417_s29 }
0x137c   :  { %v952_v23 = vld [vmem:[#allocation5 + $0x8] sm:$0xf] }
0x13e7   :  { %v948_v21 = vpop.permute.xlu1 %947 }
0x13e8   :  { %950 = vst.msk [vmem:[#allocation5] sm:$0x3] %vm380_vm7, %v948_v21 }
0x13ef   :  { %v951_v22 = vld [vmem:[#allocation5] sm:$0xff] }
0x13f0   :  { %v953_v24 = vpack.c.bf16 %v952_v23, %v951_v22 }
0x13f2   :  { %1235 = vmatmul.mubr.msk.bf16.vlgmr.msra.gmra.mxu0 %vm187_vm2, %v953_v24 }
0x14b2   :  { %v1014_v25 = vpop.f32.mrf.mxu0 }
0x14b3   :  { %v1015_v26 = vadd.f32 %v1121_v0, %v1014_v25 }
0x14b4   :  { %v1236_v27 = vpop.f32.mrf.mxu0 }
0x14b5   :  { %v1023_v30 = vadd.f32 %v1021_v28, %v1015_v26 }
0x14b6   :  { %v1017_v31 = vpop.f32.mrf.mxu0 }
0x14b7   :  { %v1018_v32 = vadd.f32 %v1121_v0, %v1017_v31  ;;  %v1025_v33 = vsel %vm187_vm2, %v1023_v30, 0.0 }
0x14b8   :  { %1026 = vadd.xlane.f32.xlu0 %v1025_v33  ;;  %v1237_v34 = vpop.f32.mrf.mxu0 }
0x14b9   :  { %v1024_v36 = vadd.f32 %v1022_v35, %v1018_v32 }
0x14bb   :  { %v1028_v37 = vsel %vm251_vm3, %v1024_v36, 0.0 }
0x14bc   :  { %1029 = vadd.xlane.f32.xlu1 %v1028_v37 }
0x1541   :  { %v1027_v38 = vpop.xlane.xlu0 %1026 }
0x1542   :  { %v1032_v10 = vmul.f32 0.03125, %v1027_v38 }
0x1544   :  { %v1034_v39 = vsub.f32 %v1023_v30, %v1032_v10 }
0x1545   :  { %v1030_v40 = vpop.xlane.xlu1 %1029 }
0x1546   :  { %v1033_v41 = vmul.f32 0.03125, %v1030_v40  ;;  %v1036_v42 = vmul.f32 %v1034_v39, %v1034_v39 }
0x1548   :  { %v1035_v43 = vsub.f32 %v1024_v36, %v1033_v41  ;;  %v1038_v11 = vsel %vm187_vm2, %v1036_v42, 0.0 }
0x1549   :  { %1039 = vadd.xlane.f32.xlu0 %v1038_v11 }
0x154a   :  { %v1037_v44 = vmul.f32 %v1035_v43, %v1035_v43 }
0x154c   :  { %v1041_v45 = vsel %vm251_vm3, %v1037_v44, 0.0 }
0x154d   :  { %1042 = vadd.xlane.f32.xlu0 %v1041_v45 }
0x15d2   :  { %v1040_v46 = vpop.xlane.xlu0 %1039 }
0x15d3   :  { %v1044_v47 = vmul.f32 0.03125, %v1040_v46 }
0x15d5   :  { %v1046_v48 = vadd.f32 1e-05, %v1044_v47 }
0x15d6   :  { %v1043_v49 = vpop.xlane.xlu0 %1042 }
0x15d7   :  { %1360 = vrsqrt.f32 %v1046_v48  ;;  %v1045_v50 = vmul.f32 0.03125, %v1043_v49 }
0x15d9   :  { %v1047_v51 = vadd.f32 1e-05, %v1045_v50 }
0x15db   :  { %1362 = vrsqrt.f32 %v1047_v51 }
0x15e4   :  { %v1361_v52 = vpop.eup %1360 }
0x15e5   :  { %v1050_v29 = vmul.f32 %v1361_v52, %v1034_v39 }
0x15e7   :  { %v1059_v55 = vmul.f32 %v1125_v53, %v1050_v29 }
0x15e8   :  { %v1363_v56 = vpop.eup %1362 }
0x15e9   :  { %v1051_v57 = vmul.f32 %v1363_v56, %v1035_v43  ;;  %v1068_v58 = vadd.f32 %v1126_v54, %v1059_v55 }
0x15eb   :  { %v1060_v59 = vmul.f32 %v1125_v53, %v1051_v57  ;;  %1070 = vst.msk [vmem:[#allocation9] sm:$0xff] %vm187_vm2, %v1068_v58 }
0x15ed   :  { %v1069_v60 = vadd.f32 %v1126_v54, %v1060_v59 }
0x15ef   :  { %1071 = vst.msk [vmem:[#allocation9 + $0x8] sm:$0xf] %vm251_vm3, %v1069_v60 }
0x15f0   :  { %1395 = shalt.err (!%p1392_p9)
}
0x15f1   :  { %s1419_s9 = smov 128   ;;  %s1420_s10 = smov 8  }
0x15f2   :  { %1083 = dma.vmem_to_hbm [thread:$0]  %s1078_s1, 256, %s1725_s11, [#allocation8], %s1419_s9, %s1419_s9, %s1420_s10  }
0x15f3   :  { %1406 = dma.done.wait [#allocation8], 256  }
0x15f4   :  { %1407 = vsyncadd [#allocation8], 4294967040 }
0x15f5   :  { %1087 = vsyncpa [#allocation7], 1 }
0x15f6   :  { %1088 = vsyncpa [#allocation8], 1 }

</bundles_post_ra>
